<compile_context>
chip_gen: v7x
topology: tpu7x:2x2x1
jax: 0.10.0
libtpu: 0.0.40
codegen_flags: <defaults>
</compile_context>

<pallas_src>
import functools

import jax
import jax.numpy as jnp
from jax.experimental import pallas as pl
from jax.experimental.pallas import tpu as pltpu


# ----------------------------------------------------------------------------
# Pallas kernel: head-group chunked (online-softmax) attention
# ----------------------------------------------------------------------------
def _efficient_attn_kernel(q_ref, k_ref, v_ref, o_ref, m_sc, l_sc, acc_sc, qs_sc,
                           *, scale, group_heads):
    """One (batch, head_group, q_chunk, k_chunk) step of memory-efficient attention.

    q_ref: (G, tq, D)   k_ref/v_ref: (G, tk, D)   o_ref: (tq, G*D)  (lane-dense slab)
    Scratch (persistent across the key-chunk grid axis):
      m_sc (G,tq,1) running max, l_sc (G,tq,1) running exp-sum,
      acc_sc (G,tq,D) running attn*V sum (f32), qs_sc (G,tq,D) hoisted q*scale.
    """
    kv = pl.program_id(3)

    @pl.when(kv == 0)
    def _init():
        m_sc[...] = jnp.full_like(m_sc, -jnp.inf)
        l_sc[...] = jnp.zeros_like(l_sc)
        acc_sc[...] = jnp.zeros_like(acc_sc)
        # Hoisted q * d**-0.5: computed once per (batch, head-group, q-chunk),
        # not once per kv step (q block is resident across the kv axis anyway).
        qs_sc[...] = q_ref[...] * scale

    q = qs_sc[...]
    k = k_ref[...]
    v = v_ref[...]

    # qk = einsum('g i d, g j d -> g i j'): bf16 operands, f32 accumulation on the MXU,
    # no materialized k transpose.
    s = jnp.einsum("gqd,gkd->gqk", q, k, preferred_element_type=jnp.float32)

    chunk_max = jnp.max(s, axis=-1, keepdims=True)                 # per-chunk qk_max
    m_prev = m_sc[...]
    m_new = jnp.maximum(m_prev, chunk_max)                         # running global max
    renorm = jnp.exp(m_prev - m_new)                               # renorm of prev chunks
    p = jnp.exp(s - m_new)                                         # exp(qk - max)

    l_sc[...] = renorm * l_sc[...] + jnp.sum(p, axis=-1, keepdims=True)
    acc_sc[...] = renorm * acc_sc[...] + jnp.einsum(
        "gqk,gkd->gqd", p.astype(v.dtype), v, preferred_element_type=jnp.float32)
    m_sc[...] = m_new

    @pl.when(kv == pl.num_programs(3) - 1)
    def _finalize():
        # qkv = attn_chunk.sum / (1e-8 + exp_qkv.sum).  Exact reciprocal: this runs once
        # per q-chunk (off the per-kv-step critical path), so the cost is negligible and
        # parity with the torch divide is closer than the EUP approximation.
        inv = pl.reciprocal(1e-8 + l_sc[...], approx=False)        # (G, tq, 1)
        out = acc_sc[...] * inv                                    # (G, tq, D) f32
        if group_heads == 1:
            slab = out[0]
        else:
            # Merge heads of this group into one lane-dense (tq, G*D) slab in
            # 'b n (h d)' order; single full-width store (no per-head masked stores).
            slab = jnp.concatenate([out[g] for g in range(group_heads)], axis=-1)
        o_ref[...] = slab.astype(o_ref.dtype)


def _head_group_size(num_heads, head_dim):
    """Smallest divisor of num_heads whose output slab (G*D) spans >= 128 lanes."""
    target = min(num_heads, max(1, -(-128 // head_dim)))           # ceil(128/D), capped
    for g in range(target, num_heads + 1):
        if num_heads % g == 0:
            return g
    return num_heads


def _vmem_bytes(g, tq, tk, d, itemsize):
    """Honest footprint: double-buffered blocks + scratch + live f32 s/p intermediates."""
    lane = 128
    blocks = 2 * itemsize * (g * tq * max(d, lane) + 2 * g * tk * max(d, lane))  # q,k,v
    out = 2 * itemsize * tq * max(g * d, lane)                                   # output
    scratch = (4 * (2 * g * tq * lane + g * tq * max(d, lane))                   # m,l,acc
               + itemsize * g * tq * max(d, lane))                               # q*scale
    live = 2 * 4 * g * tq * max(tk, lane)                                        # s and p
    return blocks + out + scratch + live


def efficient_attention_pallas(q, k, v, *, qry_chunk, key_chunk):
    """q, k, v: (B, H, N, D) -> (B, N, H*D) (heads merged, 'b n (h d)' order)."""
    b, h, n, d = q.shape
    tq = min(qry_chunk, n)
    tk = min(key_chunk, n)
    assert n % tq == 0 and n % tk == 0, (n, tq, tk)
    g = _head_group_size(h, d)
    n_groups = h // g
    e = h * d
    scale = float(d) ** -0.5
    itemsize = q.dtype.itemsize

    try:
        vmem_cap = int(pltpu.get_tpu_info().vmem_capacity_bytes)
    except Exception:
        vmem_cap = 64 << 20   # conservative fallback (v7x per-TensorCore VMEM)

    # Generation-aware clamping: shrink chunks if the honest footprint would not fit
    # (halving keeps divisibility: tk | n and tk even  =>  tk/2 | n).
    budget = int(0.7 * vmem_cap)
    while _vmem_bytes(g, tq, tk, d, itemsize) > budget and tk > 256:
        tk //= 2
    while _vmem_bytes(g, tq, tk, d, itemsize) > budget and tq > 256:
        tq //= 2

    grid = (b, n_groups, n // tq, n // tk)
    kernel = functools.partial(_efficient_attn_kernel, scale=scale, group_heads=g)

    # Advisory cost for XLA's scheduler; K/V are re-streamed once per q-chunk sweep.
    cost = pl.CostEstimate(
        flops=4 * b * h * n * n * d,
        transcendentals=b * h * n * n,
        bytes_accessed=int((b * h * n * d * (1 + 2 * (n // tq)) + b * n * e) * itemsize),
    )

    need = _vmem_bytes(g, tq, tk, d, itemsize)
    vmem_limit = int(min(vmem_cap, max(32 << 20, 2 * need)))

    return pl.pallas_call(
        kernel,
        out_shape=jax.ShapeDtypeStruct((b, n, e), q.dtype),
        grid_spec=pltpu.PrefetchScalarGridSpec(
            num_scalar_prefetch=0,
            grid=grid,
            in_specs=[
                pl.BlockSpec((None, g, tq, d), lambda bi, hg, qi, ki: (bi, hg, qi, 0)),
                pl.BlockSpec((None, g, tk, d), lambda bi, hg, qi, ki: (bi, hg, ki, 0)),
                pl.BlockSpec((None, g, tk, d), lambda bi, hg, qi, ki: (bi, hg, ki, 0)),
            ],
            out_specs=pl.BlockSpec((None, tq, g * d),
                                   lambda bi, hg, qi, ki: (bi, qi, hg)),
            scratch_shapes=[
                pltpu.VMEM((g, tq, 1), jnp.float32),   # m (running max)
                pltpu.VMEM((g, tq, 1), jnp.float32),   # l (running exp-sum)
                pltpu.VMEM((g, tq, d), jnp.float32),   # acc (running attn*V, f32)
                pltpu.VMEM((g, tq, d), q.dtype),       # hoisted q*scale
            ],
        ),
        compiler_params=pltpu.CompilerParams(
            dimension_semantics=("parallel", "parallel", "parallel", "arbitrary"),
            vmem_limit_bytes=vmem_limit,
        ),
        cost_estimate=cost,
    )(q, k, v)


# ----------------------------------------------------------------------------
# Plain-JAX glue: LinearAdapter projections, LayerNorm, residual, head split
# ----------------------------------------------------------------------------
def _layer_norm(x, gamma, beta, eps=1e-5):
    mean = jnp.mean(x, axis=-1, keepdims=True)
    var = jnp.mean((x - mean) ** 2, axis=-1, keepdims=True)
    return (x - mean) / jnp.sqrt(var + eps) * gamma + beta


def init_params(key, input_dim, embed_dim):
    """Deterministic (PRNGKey-driven) init mimicking torch nn.Linear defaults."""
    ks = jax.random.split(key, 8)

    def lin(kw, kb, fan_in, fan_out):
        bound = 1.0 / (fan_in ** 0.5)
        w = jax.random.uniform(kw, (fan_in, fan_out), jnp.float32, -bound, bound)
        b = jax.random.uniform(kb, (fan_out,), jnp.float32, -bound, bound)
        return w, b

    wq, bq = lin(ks[0], ks[1], input_dim, embed_dim)
    wk, bk = lin(ks[2], ks[3], input_dim, embed_dim)
    wv, bv = lin(ks[4], ks[5], input_dim, embed_dim)
    wo, bo = lin(ks[6], ks[7], embed_dim, input_dim)
    return dict(
        wq=wq, bq=bq, wk=wk, bk=bk, wv=wv, bv=bv, wo=wo, bo=bo,
        ln_g=jnp.ones((embed_dim,), jnp.float32),   # nn.LayerNorm default weight
        ln_b=jnp.zeros((embed_dim,), jnp.float32),  # nn.LayerNorm default bias
    )


def _split_heads(t, num_heads):
    b, n, e = t.shape
    d = e // num_heads
    return t.reshape(b, n, num_heads, d).transpose(0, 2, 1, 3)   # (B, H, N, D)


def efficient_attention_forward(params, qry, *, num_heads, qry_chunk=512, key_chunk=1024,
                                attn_impl=efficient_attention_pallas,
                                compute_dtype=jnp.bfloat16):
    """Mirrors EfficientAttention.forward with key=val=None, pre_norm=True, dropout=0."""
    # qkv_adapt(qry, key, val) -> projections (key/val default to qry)
    q = qry @ params["wq"] + params["bq"]
    k = qry @ params["wk"] + params["bk"]
    v = qry @ params["wv"] + params["bv"]

    # pre-norm on the query (embed() is identity: no positional embeddings)
    qn = _layer_norm(q, params["ln_g"], params["ln_b"])

    # bf16 operands for the attention matmuls (MXU-native on v5e/v6e/v7x); the kernel
    # keeps accumulation in f32 via preferred_element_type.
    qh = _split_heads(qn, num_heads).astype(compute_dtype)
    kh = _split_heads(k, num_heads).astype(compute_dtype)
    vh = _split_heads(v, num_heads).astype(compute_dtype)

    # Kernel returns heads already merged in 'b n (h d)' layout (lane-dense output).
    attn = attn_impl(qh, kh, vh, qry_chunk=qry_chunk, key_chunk=key_chunk)

    out = attn.astype(qn.dtype) + qn     # out += qry (the normed, projected query)
    # pre_norm=True -> no post-norm
    return out @ params["wo"] + params["bo"]   # qkv_adapt(out): output projection


# ----------------------------------------------------------------------------
# Pure-JAX reference attention (for correctness check)
# ----------------------------------------------------------------------------
def _reference_attention(q, k, v, *, qry_chunk=None, key_chunk=None):
    b, h, n, d = q.shape
    qf, kf, vf = (t.astype(jnp.float32) for t in (q, k, v))
    s = jnp.einsum("bhid,bhjd->bhij", qf * (d ** -0.5), kf)
    m = jnp.max(s, axis=-1, keepdims=True)
    e = jnp.exp(s - m)
    o = jnp.einsum("bhij,bhjd->bhid", e, vf) / (1e-8 + jnp.sum(e, axis=-1, keepdims=True))
    o = o.transpose(0, 2, 1, 3).reshape(b, n, h * d)   # 'b h n d -> b n (h d)'
    return o.astype(q.dtype)                            # match kernel output dtype


# ----------------------------------------------------------------------------
if __name__ == "__main__":
    B, N = 2, 128
    INPUT_DIM, EMBED_DIM, NUM_HEADS = 32, 64, 2
    # Small chunks so the demo exercises the multi-chunk online softmax; real runs
    # should use the module defaults (512/1024), which the wrapper clamps to N and
    # to the device VMEM budget.
    QRY_CHUNK, KEY_CHUNK = 64, 64

    root = jax.random.PRNGKey(0)
    k_x, k_p = jax.random.split(root)
    x = jax.random.normal(k_x, (B, N, INPUT_DIM), dtype=jnp.float32)
    params = init_params(k_p, INPUT_DIM, EMBED_DIM)

    out = efficient_attention_forward(
        params, x, num_heads=NUM_HEADS, qry_chunk=QRY_CHUNK, key_chunk=KEY_CHUNK)
    out = jax.block_until_ready(out)

    ref = efficient_attention_forward(
        params, x, num_heads=NUM_HEADS, qry_chunk=QRY_CHUNK, key_chunk=KEY_CHUNK,
        attn_impl=_reference_attention)
    ref = jax.block_until_ready(ref)

    assert out.shape == (B, N, INPUT_DIM), out.shape
    # Tolerance accounts for the bf16 operand path (q*scale rounding, p cast to bf16
    # for the p.v matmul) versus the f32 reference; accumulation itself is f32.
    max_err = float(jnp.max(jnp.abs(out - ref)))
    assert max_err < 3e-2, f"mismatch vs reference: {max_err}"

    print("KERNEL_OK")
</pallas_src>

<mosaic_0001>
module attributes {stable_mosaic.version = 11 : i64} {
  func.func @_efficient_attn_kernel(%arg0: i32, %arg1: i32, %arg2: i32, %arg3: i32, %arg4: memref<1x2x64x32xbf16, #tpu.memory_space<vmem>>, %arg5: memref<1x2x64x32xbf16, #tpu.memory_space<vmem>>, %arg6: memref<1x2x64x32xbf16, #tpu.memory_space<vmem>>, %arg7: memref<1x64x64xbf16, #tpu.memory_space<vmem>>, %arg8: memref<2x64x1xf32, #tpu.memory_space<vmem>>, %arg9: memref<2x64x1xf32, #tpu.memory_space<vmem>>, %arg10: memref<2x64x32xf32, #tpu.memory_space<vmem>>, %arg11: memref<2x64x32xbf16, #tpu.memory_space<vmem>>) attributes {dimension_semantics = [#tpu.dimension_semantics<parallel>, #tpu.dimension_semantics<parallel>, #tpu.dimension_semantics<parallel>, #tpu.dimension_semantics<arbitrary>], iteration_bounds = array<i64: 2, 1, 2, 2>, scalar_prefetch = 0 : i64, scratch_operands = 4 : i64, tpu.core_type = #tpu.core_type<tc>, window_params = [{transform_indices = @transform_0, window_bounds = array<i64: 1, 2, 64, 32>}, {transform_indices = @transform_1, window_bounds = array<i64: 1, 2, 64, 32>}, {transform_indices = @transform_2, window_bounds = array<i64: 1, 2, 64, 32>}, {transform_indices = @transform_3, window_bounds = array<i64: 1, 64, 64>}]} {
    %c0_i32 = arith.constant 0 : i32
    %0 = arith.cmpi eq, %arg3, %c0_i32 : i32
    %1 = arith.extui %0 : i1 to i32
    %c0_i32_0 = arith.constant 0 : i32
    %2 = arith.cmpi ne, %1, %c0_i32_0 : i32
    scf.if %2 {
      %cst_33 = arith.constant 0xFF800000 : f32
      %35 = vector.broadcast %cst_33 : f32 to vector<2x64x1xf32>
      %c0_34 = arith.constant 0 : index
      %c0_35 = arith.constant 0 : index
      %c0_36 = arith.constant 0 : index
      %36 = vector.load %arg8[%c0_34, %c0_35, %c0_36] : memref<2x64x1xf32, #tpu.memory_space<vmem>>, vector<2x64x1xf32>
      tpu.vector_store %arg8[%c0_34, %c0_35, %c0_36], %35 {strides = array<i32>} : memref<2x64x1xf32, #tpu.memory_space<vmem>>, vector<2x64x1xf32>,
      %cst_37 = arith.constant 0.000000e+00 : f32
      %37 = vector.broadcast %cst_37 : f32 to vector<2x64x1xf32>
      %c0_38 = arith.constant 0 : index
      %c0_39 = arith.constant 0 : index
      %c0_40 = arith.constant 0 : index
      %38 = vector.load %arg9[%c0_38, %c0_39, %c0_40] : memref<2x64x1xf32, #tpu.memory_space<vmem>>, vector<2x64x1xf32>
      tpu.vector_store %arg9[%c0_38, %c0_39, %c0_40], %37 {strides = array<i32>} : memref<2x64x1xf32, #tpu.memory_space<vmem>>, vector<2x64x1xf32>,
      %cst_41 = arith.constant 0.000000e+00 : f32
      %39 = vector.broadcast %cst_41 : f32 to vector<2x64x32xf32>
      %c0_42 = arith.constant 0 : index
      %c0_43 = arith.constant 0 : index
      %c0_44 = arith.constant 0 : index
      %40 = vector.load %arg10[%c0_42, %c0_43, %c0_44] : memref<2x64x32xf32, #tpu.memory_space<vmem>>, vector<2x64x32xf32>
      tpu.vector_store %arg10[%c0_42, %c0_43, %c0_44], %39 {strides = array<i32>} : memref<2x64x32xf32, #tpu.memory_space<vmem>>, vector<2x64x32xf32>,
      %c0_45 = arith.constant 0 : index
      %c0_46 = arith.constant 0 : index
      %c0_47 = arith.constant 0 : index
      %c0_48 = arith.constant 0 : index
      %41 = vector.load %arg4[%c0_45, %c0_46, %c0_47, %c0_48] : memref<1x2x64x32xbf16, #tpu.memory_space<vmem>>, vector<1x2x64x32xbf16>
      %42 = vector.shape_cast %41 : vector<1x2x64x32xbf16> to vector<2x64x32xbf16>
      %cst_49 = arith.constant 1.767580e-01 : bf16
      %43 = vector.broadcast %cst_49 : bf16 to vector<2x64x32xbf16>
      %44 = arith.mulf %42, %43 : vector<2x64x32xbf16>
      %c0_50 = arith.constant 0 : index
      %c0_51 = arith.constant 0 : index
      %c0_52 = arith.constant 0 : index
      %45 = vector.load %arg11[%c0_50, %c0_51, %c0_52] : memref<2x64x32xbf16, #tpu.memory_space<vmem>>, vector<2x64x32xbf16>
      tpu.vector_store %arg11[%c0_50, %c0_51, %c0_52], %44 {strides = array<i32>} : memref<2x64x32xbf16, #tpu.memory_space<vmem>>, vector<2x64x32xbf16>,
    } else {
    }
    %c0 = arith.constant 0 : index
    %c0_1 = arith.constant 0 : index
    %c0_2 = arith.constant 0 : index
    %3 = vector.load %arg11[%c0, %c0_1, %c0_2] : memref<2x64x32xbf16, #tpu.memory_space<vmem>>, vector<2x64x32xbf16>
    %c0_3 = arith.constant 0 : index
    %c0_4 = arith.constant 0 : index
    %c0_5 = arith.constant 0 : index
    %c0_6 = arith.constant 0 : index
    %4 = vector.load %arg5[%c0_3, %c0_4, %c0_5, %c0_6] : memref<1x2x64x32xbf16, #tpu.memory_space<vmem>>, vector<1x2x64x32xbf16>
    %5 = vector.shape_cast %4 : vector<1x2x64x32xbf16> to vector<2x64x32xbf16>
    %c0_7 = arith.constant 0 : index
    %c0_8 = arith.constant 0 : index
    %c0_9 = arith.constant 0 : index
    %c0_10 = arith.constant 0 : index
    %6 = vector.load %arg6[%c0_7, %c0_8, %c0_9, %c0_10] : memref<1x2x64x32xbf16, #tpu.memory_space<vmem>>, vector<1x2x64x32xbf16>
    %7 = vector.shape_cast %6 : vector<1x2x64x32xbf16> to vector<2x64x32xbf16>
    "tpu.trace_start"() <{level = 10 : i32, message = "gqd,gkd->gqk"}> : () -> ()
    %cst = arith.constant dense<0.000000e+00> : vector<2x64x64xf32>
    %8 = tpu.matmul %3, %5, %cst {dimension_numbers = #tpu.dot_dimension_numbers<[2], [2], [1], [1], [0, 0, 0, 1, 1, 1], [0], [0]>} : vector<2x64x32xbf16>, vector<2x64x32xbf16>, vector<2x64x64xf32> -> vector<2x64x64xf32>
    "tpu.trace_stop"() : () -> ()
    %cst_11 = arith.constant dense<0xFF800000> : vector<2x64xf32>
    %9 = vector.multi_reduction <maximumf>, %8, %cst_11 [2] : vector<2x64x64xf32> to vector<2x64xf32>
    %10 = vector.shape_cast %9 : vector<2x64xf32> to vector<2x64x1xf32>
    %c0_12 = arith.constant 0 : index
    %c0_13 = arith.constant 0 : index
    %c0_14 = arith.constant 0 : index
    %11 = vector.load %arg8[%c0_12, %c0_13, %c0_14] : memref<2x64x1xf32, #tpu.memory_space<vmem>>, vector<2x64x1xf32>
    %12 = arith.maximumf %11, %10 : vector<2x64x1xf32>
    %13 = arith.subf %11, %12 : vector<2x64x1xf32>
    %14 = math.exp %13 : vector<2x64x1xf32>
    %15 = vector.broadcast %12 : vector<2x64x1xf32> to vector<2x64x64xf32>
    %16 = arith.subf %8, %15 : vector<2x64x64xf32>
    %17 = math.exp %16 : vector<2x64x64xf32>
    %c0_15 = arith.constant 0 : index
    %c0_16 = arith.constant 0 : index
    %c0_17 = arith.constant 0 : index
    %18 = vector.load %arg9[%c0_15, %c0_16, %c0_17] : memref<2x64x1xf32, #tpu.memory_space<vmem>>, vector<2x64x1xf32>
    %19 = arith.mulf %14, %18 : vector<2x64x1xf32>
    %cst_18 = arith.constant dense<0.000000e+00> : vector<2x64xf32>
    %20 = vector.multi_reduction <add>, %17, %cst_18 [2] : vector<2x64x64xf32> to vector<2x64xf32>
    %21 = vector.shape_cast %20 : vector<2x64xf32> to vector<2x64x1xf32>
    %22 = arith.addf %19, %21 : vector<2x64x1xf32>
    %c0_19 = arith.constant 0 : index
    %c0_20 = arith.constant 0 : index
    %c0_21 = arith.constant 0 : index
    %23 = vector.load %arg9[%c0_19, %c0_20, %c0_21] : memref<2x64x1xf32, #tpu.memory_space<vmem>>, vector<2x64x1xf32>
    tpu.vector_store %arg9[%c0_19, %c0_20, %c0_21], %22 {strides = array<i32>} : memref<2x64x1xf32, #tpu.memory_space<vmem>>, vector<2x64x1xf32>,
    %c0_22 = arith.constant 0 : index
    %c0_23 = arith.constant 0 : index
    %c0_24 = arith.constant 0 : index
    %24 = vector.load %arg10[%c0_22, %c0_23, %c0_24] : memref<2x64x32xf32, #tpu.memory_space<vmem>>, vector<2x64x32xf32>
    %25 = vector.broadcast %14 : vector<2x64x1xf32> to vector<2x64x32xf32>
    %26 = arith.mulf %25, %24 : vector<2x64x32xf32>
    %27 = arith.truncf %17 : vector<2x64x64xf32> to vector<2x64x64xbf16>
    "tpu.trace_start"() <{level = 10 : i32, message = "gqk,gkd->gqd"}> : () -> ()
    %cst_25 = arith.constant dense<0.000000e+00> : vector<2x64x32xf32>
    %28 = tpu.matmul %27, %7, %cst_25 {dimension_numbers = #tpu.dot_dimension_numbers<[2], [1], [1], [2], [0, 0, 0, 1, 1, 2], [0], [0]>} : vector<2x64x64xbf16>, vector<2x64x32xbf16>, vector<2x64x32xf32> -> vector<2x64x32xf32>
    "tpu.trace_stop"() : () -> ()
    %29 = arith.addf %26, %28 : vector<2x64x32xf32>
    %c0_26 = arith.constant 0 : index
    %c0_27 = arith.constant 0 : index
    %c0_28 = arith.constant 0 : index
    %30 = vector.load %arg10[%c0_26, %c0_27, %c0_28] : memref<2x64x32xf32, #tpu.memory_space<vmem>>, vector<2x64x32xf32>
    tpu.vector_store %arg10[%c0_26, %c0_27, %c0_28], %29 {strides = array<i32>} : memref<2x64x32xf32, #tpu.memory_space<vmem>>, vector<2x64x32xf32>,
    %c0_29 = arith.constant 0 : index
    %c0_30 = arith.constant 0 : index
    %c0_31 = arith.constant 0 : index
    %31 = vector.load %arg8[%c0_29, %c0_30, %c0_31] : memref<2x64x1xf32, #tpu.memory_space<vmem>>, vector<2x64x1xf32>
    tpu.vector_store %arg8[%c0_29, %c0_30, %c0_31], %12 {strides = array<i32>} : memref<2x64x1xf32, #tpu.memory_space<vmem>>, vector<2x64x1xf32>,
    %c1_i32 = arith.constant 1 : i32
    %32 = arith.cmpi eq, %arg3, %c1_i32 : i32
    %33 = arith.extui %32 : i1 to i32
    %c0_i32_32 = arith.constant 0 : i32
    %34 = arith.cmpi ne, %33, %c0_i32_32 : i32
    scf.if %34 {
      %c0_33 = arith.constant 0 : index
      %c0_34 = arith.constant 0 : index
      %c0_35 = arith.constant 0 : index
      %35 = vector.load %arg9[%c0_33, %c0_34, %c0_35] : memref<2x64x1xf32, #tpu.memory_space<vmem>>, vector<2x64x1xf32>
      %cst_36 = arith.constant 9.99999993E-9 : f32
      %36 = vector.broadcast %cst_36 : f32 to vector<2x64x1xf32>
      %37 = arith.addf %36, %35 : vector<2x64x1xf32>
      %38 = tpu.reciprocal %37 : vector<2x64x1xf32> -> vector<2x64x1xf32>
      %c0_37 = arith.constant 0 : index
      %c0_38 = arith.constant 0 : index
      %c0_39 = arith.constant 0 : index
      %39 = vector.load %arg10[%c0_37, %c0_38, %c0_39] : memref<2x64x32xf32, #tpu.memory_space<vmem>>, vector<2x64x32xf32>
      %40 = vector.broadcast %38 : vector<2x64x1xf32> to vector<2x64x32xf32>
      %41 = arith.mulf %39, %40 : vector<2x64x32xf32>
      %42 = vector.extract_strided_slice %41 {offsets = [0, 0, 0], sizes = [1, 64, 32], strides = [1, 1, 1]} : vector<2x64x32xf32> to vector<1x64x32xf32>
      %43 = vector.shape_cast %42 : vector<1x64x32xf32> to vector<64x32xf32>
      %44 = vector.extract_strided_slice %41 {offsets = [1, 0, 0], sizes = [1, 64, 32], strides = [1, 1, 1]} : vector<2x64x32xf32> to vector<1x64x32xf32>
      %45 = vector.shape_cast %44 : vector<1x64x32xf32> to vector<64x32xf32>
      %46 = tpu.concatenate %43, %45 in 1 : vector<64x32xf32>, vector<64x32xf32> -> vector<64x64xf32>
      %47 = arith.truncf %46 : vector<64x64xf32> to vector<64x64xbf16>
      %c0_40 = arith.constant 0 : index
      %c0_41 = arith.constant 0 : index
      %c0_42 = arith.constant 0 : index
      %48 = vector.load %arg7[%c0_40, %c0_41, %c0_42] : memref<1x64x64xbf16, #tpu.memory_space<vmem>>, vector<1x64x64xbf16>
      %49 = vector.shape_cast %48 : vector<1x64x64xbf16> to vector<64x64xbf16>
      %50 = vector.shape_cast %47 : vector<64x64xbf16> to vector<1x64x64xbf16>
      tpu.vector_store %arg7[%c0_40, %c0_41, %c0_42], %50 {strides = array<i32>} : memref<1x64x64xbf16, #tpu.memory_space<vmem>>, vector<1x64x64xbf16>,
    } else {
    }
    return
  }
  func.func @transform_0(%arg0: i32, %arg1: i32, %arg2: i32, %arg3: i32) -> (i32, i32, i32, i32) {
    %c0_i32 = arith.constant 0 : i32
    %c0_i32_0 = arith.constant 0 : i32
    return %arg0, %arg1, %arg2, %c0_i32 : i32, i32, i32, i32
  }
  func.func @transform_1(%arg0: i32, %arg1: i32, %arg2: i32, %arg3: i32) -> (i32, i32, i32, i32) {
    %c0_i32 = arith.constant 0 : i32
    %c0_i32_0 = arith.constant 0 : i32
    return %arg0, %arg1, %arg3, %c0_i32 : i32, i32, i32, i32
  }
  func.func @transform_2(%arg0: i32, %arg1: i32, %arg2: i32, %arg3: i32) -> (i32, i32, i32, i32) {
    %c0_i32 = arith.constant 0 : i32
    %c0_i32_0 = arith.constant 0 : i32
    return %arg0, %arg1, %arg3, %c0_i32 : i32, i32, i32, i32
  }
  func.func @transform_3(%arg0: i32, %arg1: i32, %arg2: i32, %arg3: i32) -> (i32, i32, i32) {
    %c0_i32 = arith.constant 0 : i32
    return %arg0, %arg2, %arg1 : i32, i32, i32
  }
}

</mosaic_0001>

<bundles_post_ra>
// kernel: tpu_custom_call.1
= control target key start
LH: loop header
LB: loop body
LE: loop exit
PB: predicated region body
PF: predicated region fallthrough
CT: control target
= control target key end

     0   :  { %s3381_s0 = inlined_call_operand.vmem [shape: bf16[2,2,128,32], index: 0, kind: input, shape index: {}]   ;;  %s3382_s1 = inlined_call_operand.vmem [shape: bf16[2,2,128,32], index: 1, kind: input, shape index: {}]   ;;  %s3383_s2 = inlined_call_operand.vmem [shape: bf16[2,2,128,32], index: 2, kind: input, shape index: {}]   ;;  %s3384_s3 = inlined_call_operand.vmem [shape: bf16[2,128,64], index: 3, kind: output, shape index: {}]  }
   0x1   :  { %3386 = sst [smem:[#allocation10_spill]] %s3381_s0 }
   0x2   :  { %s2672_s12 = smov 0   ;;  %s2674_s13 = smov 0  }
   0x3   :  { %s2676_s14 = smov 0   ;;  %s2678_s15 = smov 0  }
   0x4   :  { %s2680_s16 = smov 0   ;;  %s2682_s17 = smov 0  }
   0x5   :  { %s2684_s18 = smov 0   ;;  %s2686_s19 = smov 0  }
   0x6   :  { %s2688_s20 = smov 0   ;;  %s2690_s21 = smov 0  }
   0x7   :  { %s2692_s22 = smov 0  }
   0x8 LB: > { %s28_s23 = sadd.s32 1, %s2633_s19  ;;  %s31_s24 = sadd.s32 1, %s2637_s20  ;;  %s2645_s22 = sphi %s2692_s22, %s13_s22   ;;  %s2641_s21 = sphi %s2690_s21, %s3401_s21   ;;  %s2637_s20 = sphi %s2688_s20, %s3400_s20   ;;  %s2633_s19 = sphi %s2686_s19, %s3399_s19   ;;  %s2629_s18 = sphi %s2684_s18, %s3398_s18   ;;  %s2625_s17 = sphi %s2682_s17, %s3397_s17   ;;  %s2621_s16 = sphi %s2680_s16, %s3396_s16   ;;  %s2617_s15 = sphi %s2678_s15, %s3395_s15   ;;  %s2613_s14 = sphi %s2676_s14, %s3394_s14   ;;  %s2609_s13 = sphi %s2674_s13, %s3393_s13   ;;  %s2605_s12 = sphi %s2672_s12, %s3392_s12  }
   0x9   : > { %p29_p0 = scmp.ge.s32.totalorder %s28_s23, 2  ;;  %p57_p1 = scmp.ne.s32.totalorder %s2617_s15, %s2613_s14 }
   0xa   : > { %p58_p2 = scmp.eq.s32.totalorder %s2645_s22, 0  ;;  %s39_s25 = sadd.s32 1, %s2641_s21 }
   0xb   : > { %s3403_s23 = smov (%p29_p0, %s28_s23), 0  ;;  %s3405_s24 = smov (!%p29_p0, %s31_s24), %s2637_s20 }
   0xc   : > { %p33_p3 = scmp.ge.s32.totalorder %s3405_s24, 2  ;;  %p2736_p4 = por %p58_p2, %p57_p1 }
   0xd   : > { %p87_p5 = scmp.ne.s32.totalorder %s2609_s13, %s2605_s12  ;;  %s76_s29 = ssub.s32 %s2633_s19, %s3403_s23 }
   0xe   : > { %s3407_s24 = smov (%p33_p3, %s3405_s24), 0  ;;  %s3409_s25 = smov (!%p33_p3, %s39_s25), %s2641_s21 }
   0xf   : > { %p2745_p6 = por %p87_p5, %p58_p2  ;;  %p41_p7 = scmp.ge.s32.totalorder %s3409_s25, 2 }
  0x10   : > { %s46_s28 = ssub.s32 %s2637_s20, %s3407_s24  ;;  %s50_s30 = sadd.s32 1, %s2617_s15 }
  0x11   : > { %s3411_s25 = smov (%p41_p7, %s3409_s25), 0  ;;  %s80_s5 = sadd.s32 1, %s2609_s13 }
  0x12   : > { %3389 = sst [smem:[#allocation9_spill]] %s3411_s25  ;;  %s43_s4 = ssub.s32 %s2641_s21, %s3411_s25 }
  0x13   : > { %s47_s6 = sor.u32 %s46_s28, %s43_s4  ;;  %s77_s7 = sor.u32 %s76_s29, %s43_s4 }
  0x14   : > { %p48_p8 = scmp.eq.s32.totalorder %s47_s6, 0  ;;  %p78_p9 = scmp.eq.s32.totalorder %s77_s7, 0 }
  0x15   : > { %p2146_p10 = scmp.ge.s32.totalorder %s2645_s22, 8 }
  0x16   : > { %s2760_s8 = scalar_select %p48_p8, %s2617_s15, %s50_s30  }
  0x17   : > { %s2763_s9 = scalar_select %p78_p9, %s2609_s13, %s80_s5  }
  0x18   : > { %173 = sbr.rel (%p2146_p10) target bundleno = 67 (0x43), region = 16 }
  0x1f   : > { %176 = sbr.rel (!%p2736_p4) target bundleno = 45 (0x2d), region = 20  ;;  %s178_s10 = sand.u32 (%p2736_p4), 1, %s2617_s15  }
  0x20   : > { %s2148_s11 = sshll.u32 (%p2736_p4), %s2637_s20, 3  ;;  %s2147_s25 = sshll.u32 (%p2736_p4), %s178_s10, 6 }
  0x21   : > { %s2149_s28 = sshll.u32 (%p2736_p4), %s2641_s21, 5  ;;  %s3390_s0 = sld [smem:[#allocation10_spill]] (%p2736_p4) }
  0x22   : > { %s186_s29 = sadd.s32 (%p2736_p4), %s2149_s28, %s2148_s11  ;;  %s180_s7 = scalar_lea.vmem (%p2736_p4), [#allocation6], %s2147_s25 }
  0x23   : > { %s2150_s4 = sshll.u32 (%p2736_p4), %s186_s29, 2 }
  0x27   : > { %s188_s5 = scalar_lea.vmem %s3390_s0, %s2150_s4 }
  0x28   : > { %v204_v0 = vld [vmem:[%s188_s5] sm:$0xff]   ;;  %v208_v1 = vld [vmem:[%s188_s5 + $0x8] sm:$0xff]   ;;  %v212_v2 = vld [vmem:[%s188_s5 + $0x10] sm:$0xff]  }
  0x29   : > { %205 = vst [vmem:[%s180_s7] sm:$0xff] %v204_v0   ;;  %209 = vst [vmem:[%s180_s7 + $0x8] sm:$0xff] %v208_v1   ;;  %v216_v3 = vld [vmem:[%s188_s5 + $0x18] sm:$0xff]   ;;  %v220_v4 = vld [vmem:[%s188_s5 + $0x40] sm:$0xff]  }
  0x2a   : > { %213 = vst [vmem:[%s180_s7 + $0x10] sm:$0xff] %v212_v2   ;;  %v224_v5 = vld [vmem:[%s188_s5 + $0x48] sm:$0xff]   ;;  %217 = vst [vmem:[%s180_s7 + $0x18] sm:$0xff] %v216_v3   ;;  %v228_v6 = vld [vmem:[%s188_s5 + $0x50] sm:$0xff]  }
  0x2b   : > { %221 = vst [vmem:[%s180_s7 + $0x20] sm:$0xff] %v220_v4   ;;  %225 = vst [vmem:[%s180_s7 + $0x28] sm:$0xff] %v224_v5   ;;  %v232_v7 = vld [vmem:[%s188_s5 + $0x58] sm:$0xff]  }
  0x2c   : > { %229 = vst [vmem:[%s180_s7 + $0x30] sm:$0xff] %v228_v6   ;;  %233 = vst [vmem:[%s180_s7 + $0x38] sm:$0xff] %v232_v7  }
  0x2d PF: > { %290 = sbr.rel (!%p2745_p6) target bundleno = 56 (0x38), region = 61  ;;  %s292_s25 = sand.u32 (%p2745_p6), 1, %s2609_s13  }
  0x2e   : > { %s2152_s26 = sshll.u32 (%p2745_p6), %s2633_s19, 3  ;;  %s2151_s10 = sshll.u32 (%p2745_p6), %s292_s25, 6 }
  0x2f   : > { %s2153_s11 = sshll.u32 (%p2745_p6), %s2641_s21, 5  ;;  %s294_s5 = scalar_lea.vmem (%p2745_p6), [#allocation7], %s2151_s10 }
  0x30   : > { %s300_s28 = sadd.s32 (%p2745_p6), %s2153_s11, %s2152_s26 }
  0x31   : > { %s2154_s29 = sshll.u32 (%p2745_p6), %s300_s28, 2 }
  0x32   : > { %s302_s30 = scalar_lea.vmem (%p2745_p6), %s3382_s1, %s2154_s29 }
  0x33   : > { %v318_v8 = vld [vmem:[%s302_s30] sm:$0xff] (%p2745_p6)   ;;  %v322_v9 = vld [vmem:[%s302_s30 + $0x8] sm:$0xff] (%p2745_p6)   ;;  %v326_v10 = vld [vmem:[%s302_s30 + $0x10] sm:$0xff] (%p2745_p6)  }
  0x34   : > { %319 = vst [vmem:[%s294_s5] sm:$0xff] %v318_v8   ;;  %323 = vst [vmem:[%s294_s5 + $0x8] sm:$0xff] %v322_v9   ;;  %v330_v11 = vld [vmem:[%s302_s30 + $0x18] sm:$0xff]   ;;  %v334_v12 = vld [vmem:[%s302_s30 + $0x40] sm:$0xff]  }
  0x35   : > { %327 = vst [vmem:[%s294_s5 + $0x10] sm:$0xff] %v326_v10   ;;  %v338_v13 = vld [vmem:[%s302_s30 + $0x48] sm:$0xff]   ;;  %331 = vst [vmem:[%s294_s5 + $0x18] sm:$0xff] %v330_v11   ;;  %v342_v14 = vld [vmem:[%s302_s30 + $0x50] sm:$0xff]  }
  0x36   : > { %335 = vst [vmem:[%s294_s5 + $0x20] sm:$0xff] %v334_v12   ;;  %339 = vst [vmem:[%s294_s5 + $0x28] sm:$0xff] %v338_v13   ;;  %v346_v15 = vld [vmem:[%s302_s30 + $0x58] sm:$0xff]  }
  0x37   : > { %343 = vst [vmem:[%s294_s5 + $0x30] sm:$0xff] %v342_v14   ;;  %347 = vst [vmem:[%s294_s5 + $0x38] sm:$0xff] %v346_v15  }
  0x38 PF: > { %404 = sbr.rel (!%p2745_p6) target bundleno = 67 (0x43), region = 102  ;;  %s406_s7 = sand.u32 (%p2745_p6), 1, %s2609_s13  }
  0x39   : > { %s2156_s25 = sshll.u32 (%p2745_p6), %s2633_s19, 3  ;;  %s2155_s26 = sshll.u32 (%p2745_p6), %s406_s7, 6 }
  0x3a   : > { %s2157_s10 = sshll.u32 (%p2745_p6), %s2641_s21, 5  ;;  %s408_s30 = scalar_lea.vmem (%p2745_p6), [#allocation8], %s2155_s26 }
  0x3b   : > { %s414_s11 = sadd.s32 (%p2745_p6), %s2157_s10, %s2156_s25 }
  0x3c   : > { %s2158_s28 = sshll.u32 (%p2745_p6), %s414_s11, 2 }
  0x3d   : > { %s416_s6 = scalar_lea.vmem (%p2745_p6), %s3383_s2, %s2158_s28 }
  0x3e   : > { %v432_v16 = vld [vmem:[%s416_s6] sm:$0xff] (%p2745_p6)   ;;  %v436_v17 = vld [vmem:[%s416_s6 + $0x8] sm:$0xff] (%p2745_p6)   ;;  %v440_v18 = vld [vmem:[%s416_s6 + $0x10] sm:$0xff] (%p2745_p6)  }
  0x3f   : > { %433 = vst [vmem:[%s408_s30] sm:$0xff] %v432_v16   ;;  %437 = vst [vmem:[%s408_s30 + $0x8] sm:$0xff] %v436_v17   ;;  %v444_v19 = vld [vmem:[%s416_s6 + $0x18] sm:$0xff]   ;;  %v448_v20 = vld [vmem:[%s416_s6 + $0x40] sm:$0xff]  }
  0x40   : > { %441 = vst [vmem:[%s408_s30 + $0x10] sm:$0xff] %v440_v18   ;;  %v452_v21 = vld [vmem:[%s416_s6 + $0x48] sm:$0xff]   ;;  %445 = vst [vmem:[%s408_s30 + $0x18] sm:$0xff] %v444_v19   ;;  %v456_v22 = vld [vmem:[%s416_s6 + $0x50] sm:$0xff]  }
  0x41   : > { %449 = vst [vmem:[%s408_s30 + $0x20] sm:$0xff] %v448_v20   ;;  %453 = vst [vmem:[%s408_s30 + $0x28] sm:$0xff] %v452_v21   ;;  %v460_v23 = vld [vmem:[%s416_s6 + $0x58] sm:$0xff]  }
  0x42   : > { %457 = vst [vmem:[%s408_s30 + $0x30] sm:$0xff] %v456_v22   ;;  %461 = vst [vmem:[%s408_s30 + $0x38] sm:$0xff] %v460_v23  }
  0x43 PF: > { %p2159_p11 = scmp.ge.s32.totalorder %s2645_s22, 1  ;;  %p517_p12 = scmp.lt.s32.totalorder %s2645_s22, 9 }
  0x45   : > { %p518_p13 = pnand %p2159_p11, %p517_p12 }
  0x46   : > { %s524_s27 = sand.u32 (!%p518_p13), 1, %s2613_s14   ;;  %s531_s5 = sand.u32 (!%p518_p13), 1, %s2605_s12  }
  0x47   : > { %521 = sbr.rel (%p518_p13) target bundleno = 1155 (0x483), region = 143  ;;  %s2160_s7 = sshll.u32 (!%p518_p13), %s524_s27, 6 }
  0x48   : > { %s2161_s25 = sshll.u32 (!%p518_p13), %s531_s5, 6  ;;  %s2163_s26 = sshll.u32 (!%p518_p13), %s2625_s17, 3 }
  0x49   : > { %p583_p0 = scmp.lt.s32.totalorder (!%p518_p13), %s2629_s18, 1  ;;  %p585_p1 = scmp.lt.s32.totalorder (!%p518_p13), %s2163_s26, 15 }
  0x4a   : > { %s2802_s30 = scalar_lea.vmem (!%p518_p13), [#allocation6], %s2160_s7  ;;  %s2804_s0 = scalar_lea.vmem (!%p518_p13), [#allocation7], %s2161_s25 }
  0x4b   : > { %s2806_s12 = scalar_lea.vmem (!%p518_p13), [#allocation8], %s2161_s25  ;;  %p2166_p2 = scmp.ne.s32.totalorder (!%p518_p13), %s2621_s16, 0 }
  0x4e   : > { %s3413_s18 = smov (!%p583_p0, %s2629_s18), 1  ;;  %s3415_s26 = smov (!%p585_p1, %s2163_s26), 15 }
  0x4f   : > { %s2164_s10 = sshll.u32 %s3413_s18, 4  ;;  %600 = sbr.rel (%p2166_p2) target bundleno = 109 (0x6d), region = 159  ;;  %vm601_vm0 = vcmask (!%p2166_p2), 7168   ;;  %vm634_vm1 = vcmask (!%p2166_p2), 261120   ;;  %v651_v24 = vld [vmem:[%s2802_s30] sm:$0xf] (!%p2166_p2) }
  0x50   : > { %s591_s11 = sadd.s32 %s2164_s10, %s3415_s26  ;;  %v2647_v25 = vmov (!%p2166_p2), -inf   ;;  %v2648_v26 = vmov (!%p2166_p2), 0.0   ;;  %v652_v27 = vld [vmem:[%s2802_s30 + $0x4] sm:$0xf] (!%p2166_p2)  ;;  %v667_v28 = vmul.bf16 (!%p2166_p2), 1043676725, %v651_v24 }
  0x51   : > { %s2165_s28 = sshll.u32 %s591_s11, 2  ;;  %602 = vst.msk [vmem:[#allocation2] sm:$0xff] (!%p2166_p2), %vm601_vm0, %v2647_v25  ;;  %603 = vst.msk [vmem:[#allocation2 + $0x8] sm:$0xff] (!%p2166_p2), %vm601_vm0, %v2647_v25  ;;  %v653_v29 = vld [vmem:[%s2802_s30 + $0x8] sm:$0xf] (!%p2166_p2) }
  0x52   : > { %s2800_s6 = scalar_lea.vmem %s3384_s3, %s2165_s28  ;;  %604 = vst.msk [vmem:[#allocation2 + $0x10] sm:$0xff] (!%p2166_p2), %vm601_vm0, %v2647_v25  ;;  %605 = vst.msk [vmem:[#allocation2 + $0x18] sm:$0xff] (!%p2166_p2), %vm601_vm0, %v2647_v25  ;;  %v668_v30 = vmul.bf16 (!%p2166_p2), 1043676725, %v652_v27  ;;  %v654_v31 = vld [vmem:[%s2802_s30 + $0xc] sm:$0xf] (!%p2166_p2) }
  0x53   : > { %606 = vst.msk [vmem:[#allocation2 + $0x20] sm:$0xff] (!%p2166_p2), %vm601_vm0, %v2647_v25  ;;  %607 = vst.msk [vmem:[#allocation2 + $0x28] sm:$0xff] (!%p2166_p2), %vm601_vm0, %v2647_v25  ;;  %v669_v32 = vmul.bf16 (!%p2166_p2), 1043676725, %v653_v29  ;;  %v670_v33 = vmul.bf16 (!%p2166_p2), 1043676725, %v654_v31 }
  0x54   : > { %608 = vst.msk [vmem:[#allocation2 + $0x30] sm:$0xff] (!%p2166_p2), %vm601_vm0, %v2647_v25  ;;  %609 = vst.msk [vmem:[#allocation2 + $0x38] sm:$0xff] (!%p2166_p2), %vm601_vm0, %v2647_v25  ;;  %v655_v34 = vld [vmem:[%s2802_s30 + $0x10] sm:$0xf] (!%p2166_p2)  ;;  %v656_v35 = vld [vmem:[%s2802_s30 + $0x14] sm:$0xf] (!%p2166_p2)  ;;  %v2167_v36 = vcombine.low (!%p2166_p2), %v667_v28, %v668_v30 }
  0x55   : > { %610 = vst.msk [vmem:[#allocation2 + $0x40] sm:$0xff] (!%p2166_p2), %vm601_vm0, %v2647_v25  ;;  %611 = vst.msk [vmem:[#allocation2 + $0x48] sm:$0xff] (!%p2166_p2), %vm601_vm0, %v2647_v25  ;;  %v671_v37 = vmul.bf16 (!%p2166_p2), 1043676725, %v655_v34  ;;  %v672_v38 = vmul.bf16 (!%p2166_p2), 1043676725, %v656_v35  ;;  %v2168_v40 = vcombine.low (!%p2166_p2), %v669_v32, %v670_v33 }
  0x56   : > { %612 = vst.msk [vmem:[#allocation2 + $0x50] sm:$0xff] %vm601_vm0, %v2647_v25  ;;  %613 = vst.msk [vmem:[#allocation2 + $0x58] sm:$0xff] %vm601_vm0, %v2647_v25  ;;  %v657_v39 = vld [vmem:[%s2802_s30 + $0x18] sm:$0xf]  ;;  %v658_v41 = vld [vmem:[%s2802_s30 + $0x1c] sm:$0xf] }
  0x57   : > { %614 = vst.msk [vmem:[#allocation2 + $0x60] sm:$0xff] %vm601_vm0, %v2647_v25  ;;  %615 = vst.msk [vmem:[#allocation2 + $0x68] sm:$0xff] %vm601_vm0, %v2647_v25  ;;  %v673_v42 = vmul.bf16 1043676725, %v657_v39  ;;  %v659_v43 = vld [vmem:[%s2802_s30 + $0x20] sm:$0xf]  ;;  %v2169_v44 = vcombine.low %v671_v37, %v672_v38 }
  0x58   : > { %616 = vst.msk [vmem:[#allocation2 + $0x70] sm:$0xff] %vm601_vm0, %v2647_v25  ;;  %617 = vst.msk [vmem:[#allocation2 + $0x78] sm:$0xff] %vm601_vm0, %v2647_v25  ;;  %v674_v45 = vmul.bf16 1043676725, %v658_v41  ;;  %v660_v46 = vld [vmem:[%s2802_s30 + $0x24] sm:$0xf] }
  0x59   : > { %618 = vst.msk [vmem:[#allocation3] sm:$0xff] %vm601_vm0, %v2648_v26  ;;  %619 = vst.msk [vmem:[#allocation3 + $0x8] sm:$0xff] %vm601_vm0, %v2648_v26  ;;  %v675_v47 = vmul.bf16 1043676725, %v659_v43  ;;  %v676_v48 = vmul.bf16 1043676725, %v660_v46 }
  0x5a   : > { %620 = vst.msk [vmem:[#allocation3 + $0x10] sm:$0xff] %vm601_vm0, %v2648_v26  ;;  %621 = vst.msk [vmem:[#allocation3 + $0x18] sm:$0xff] %vm601_vm0, %v2648_v26  ;;  %v661_v49 = vld [vmem:[%s2802_s30 + $0x28] sm:$0xf]  ;;  %v662_v50 = vld [vmem:[%s2802_s30 + $0x2c] sm:$0xf]  ;;  %v2170_v51 = vcombine.low %v673_v42, %v674_v45 }
  0x5b   : > { %622 = vst.msk [vmem:[#allocation3 + $0x20] sm:$0xff] %vm601_vm0, %v2648_v26  ;;  %623 = vst.msk [vmem:[#allocation3 + $0x28] sm:$0xff] %vm601_vm0, %v2648_v26  ;;  %v677_v52 = vmul.bf16 1043676725, %v661_v49  ;;  %v678_v53 = vmul.bf16 1043676725, %v662_v50  ;;  %v2171_v55 = vcombine.low %v675_v47, %v676_v48 }
  0x5c   : > { %624 = vst.msk [vmem:[#allocation3 + $0x30] sm:$0xff] %vm601_vm0, %v2648_v26  ;;  %625 = vst.msk [vmem:[#allocation3 + $0x38] sm:$0xff] %vm601_vm0, %v2648_v26  ;;  %v663_v54 = vld [vmem:[%s2802_s30 + $0x30] sm:$0xf]  ;;  %v664_v56 = vld [vmem:[%s2802_s30 + $0x34] sm:$0xf] }
  0x5d   : > { %626 = vst.msk [vmem:[#allocation3 + $0x40] sm:$0xff] %vm601_vm0, %v2648_v26  ;;  %627 = vst.msk [vmem:[#allocation3 + $0x48] sm:$0xff] %vm601_vm0, %v2648_v26  ;;  %v679_v57 = vmul.bf16 1043676725, %v663_v54  ;;  %v665_v58 = vld [vmem:[%s2802_s30 + $0x38] sm:$0xf]  ;;  %v2172_v59 = vcombine.low %v677_v52, %v678_v53 }
  0x5e   : > { %628 = vst.msk [vmem:[#allocation3 + $0x50] sm:$0xff] %vm601_vm0, %v2648_v26  ;;  %629 = vst.msk [vmem:[#allocation3 + $0x58] sm:$0xff] %vm601_vm0, %v2648_v26  ;;  %v680_v60 = vmul.bf16 1043676725, %v664_v56  ;;  %v666_v61 = vld [vmem:[%s2802_s30 + $0x3c] sm:$0xf] }
  0x5f   : > { %630 = vst.msk [vmem:[#allocation3 + $0x60] sm:$0xff] %vm601_vm0, %v2648_v26  ;;  %631 = vst.msk [vmem:[#allocation3 + $0x68] sm:$0xff] %vm601_vm0, %v2648_v26  ;;  %v681_v62 = vmul.bf16 1043676725, %v665_v58  ;;  %v682_v63 = vmul.bf16 1043676725, %v666_v61 }
  0x60   : > { %632 = vst.msk [vmem:[#allocation3 + $0x70] sm:$0xff] %vm601_vm0, %v2648_v26  ;;  %633 = vst.msk [vmem:[#allocation3 + $0x78] sm:$0xff] %vm601_vm0, %v2648_v26  ;;  %v2173_v0 = vcombine.low %v679_v57, %v680_v60 }
  0x61   : > { %635 = vst.msk [vmem:[#allocation4] sm:$0xff] %vm634_vm1, %v2648_v26  ;;  %636 = vst.msk [vmem:[#allocation4 + $0x8] sm:$0xff] %vm634_vm1, %v2648_v26  ;;  %v2174_v1 = vcombine.low %v681_v62, %v682_v63 }
  0x62   : > { %637 = vst.msk [vmem:[#allocation4 + $0x10] sm:$0xff] %vm634_vm1, %v2648_v26  ;;  %638 = vst.msk [vmem:[#allocation4 + $0x18] sm:$0xff] %vm634_vm1, %v2648_v26 }
  0x63   : > { %639 = vst.msk [vmem:[#allocation4 + $0x20] sm:$0xff] %vm634_vm1, %v2648_v26  ;;  %640 = vst.msk [vmem:[#allocation4 + $0x28] sm:$0xff] %vm634_vm1, %v2648_v26 }
  0x64   : > { %641 = vst.msk [vmem:[#allocation4 + $0x30] sm:$0xff] %vm634_vm1, %v2648_v26  ;;  %642 = vst.msk [vmem:[#allocation4 + $0x38] sm:$0xff] %vm634_vm1, %v2648_v26 }
  0x65   : > { %643 = vst.msk [vmem:[#allocation4 + $0x40] sm:$0xff] %vm634_vm1, %v2648_v26  ;;  %644 = vst.msk [vmem:[#allocation4 + $0x48] sm:$0xff] %vm634_vm1, %v2648_v26 }
  0x66   : > { %645 = vst.msk [vmem:[#allocation4 + $0x50] sm:$0xff] %vm634_vm1, %v2648_v26  ;;  %646 = vst.msk [vmem:[#allocation4 + $0x58] sm:$0xff] %vm634_vm1, %v2648_v26 }
  0x67   : > { %647 = vst.msk [vmem:[#allocation4 + $0x60] sm:$0xff] %vm634_vm1, %v2648_v26  ;;  %648 = vst.msk [vmem:[#allocation4 + $0x68] sm:$0xff] %vm634_vm1, %v2648_v26 }
  0x68   : > { %649 = vst.msk [vmem:[#allocation4 + $0x70] sm:$0xff] %vm634_vm1, %v2648_v26  ;;  %650 = vst.msk [vmem:[#allocation4 + $0x78] sm:$0xff] %vm634_vm1, %v2648_v26 }
  0x69   : > { %731 = vst.msk [vmem:[#allocation5] sm:$0xff] %vm634_vm1, %v2167_v36  ;;  %732 = vst.msk [vmem:[#allocation5 + $0x8] sm:$0xff] %vm634_vm1, %v2168_v40 }
  0x6a   : > { %733 = vst.msk [vmem:[#allocation5 + $0x10] sm:$0xff] %vm634_vm1, %v2169_v44  ;;  %734 = vst.msk [vmem:[#allocation5 + $0x18] sm:$0xff] %vm634_vm1, %v2170_v51 }
  0x6b   : > { %735 = vst.msk [vmem:[#allocation5 + $0x20] sm:$0xff] %vm634_vm1, %v2171_v55  ;;  %736 = vst.msk [vmem:[#allocation5 + $0x28] sm:$0xff] %vm634_vm1, %v2172_v59 }
  0x6c   : > { %737 = vst.msk [vmem:[#allocation5 + $0x30] sm:$0xff] %vm634_vm1, %v2173_v0  ;;  %738 = vst.msk [vmem:[#allocation5 + $0x38] sm:$0xff] %vm634_vm1, %v2174_v1 }
  0x6d PF: > { %v2425_v2 = vld [vmem:[%s2804_s0] sm:$0xff]   ;;  %vm799_vm2 = vcmask 261120   ;;  %v2427_v5 = vld [vmem:[%s2804_s0 + $0x8] sm:$0xff]   ;;  %v2429_v9 = vld [vmem:[%s2804_s0 + $0x10] sm:$0xff]   ;;  %vm998_vm3 = vcmask 523264   ;;  %v2649_v52 = vmov 0  }
  0x6e   : > { %v2426_v3 = vld [vmem:[%s2804_s0 + $0x20] sm:$0xff]   ;;  %2322 = vmatprep.subr.msk.bf16.mxu0 %vm799_vm2, %v2425_v2  ;;  %v813_v4 = vsel %vm799_vm2, %v2425_v2, 0  ;;  %v2428_v7 = vld [vmem:[%s2804_s0 + $0x28] sm:$0xff]   ;;  %v816_v8 = vsel %vm799_vm2, %v2427_v5, 0  ;;  %v2430_v13 = vld [vmem:[%s2804_s0 + $0x30] sm:$0xff]   ;;  %v819_v14 = vsel %vm799_vm2, %v2429_v9, 0  ;;  %2423 = vset.pattern.permute.xlu1 %v2649_v52 }
  0x6f   : > { %2326 = vmatprep.subr.msk.bf16.mxu1 %vm799_vm2, %v2426_v3  ;;  %2259 = vmatpush3.bf16.xpose.msra.mxu0 %v813_v4  ;;  %v922_v6 = vsel %vm799_vm2, %v2426_v3, 0  ;;  %v925_v12 = vsel %vm799_vm2, %v2428_v7, 0  ;;  %v2431_v15 = vld [vmem:[%s2804_s0 + $0x18] sm:$0xff]   ;;  %v928_v16 = vsel %vm799_vm2, %v2430_v13, 0  ;;  %vm1351_vm4 = vcmask 7168   ;;  %p2207_p3 = scmp.ne.s32.totalorder %s2621_s16, 1 }
  0x70   : > { %2275 = vmatpush3.bf16.xpose.msra.mxu1 %v922_v6  ;;  %2323 = vmatprep.subr.msk.bf16.mxu0 %vm799_vm2, %v2427_v5  ;;  %v739_v10 = vld [vmem:[#allocation5] sm:$0xff]  ;;  %v2432_v17 = vld [vmem:[%s2804_s0 + $0x38] sm:$0xff]   ;;  %v822_v18 = vsel %vm799_vm2, %v2431_v15, 0  ;;  %v740_v20 = vld [vmem:[#allocation5 + $0x8] sm:$0xff]  ;;  %s2651_s0 = smov (!%p2207_p3), 32   ;;  %vm1974_vm5 = vcmask (!%p2207_p3), 519168  }
  0x71   : > { %2327 = vmatprep.subr.msk.bf16.mxu1 %vm799_vm2, %v2428_v7  ;;  %2266 = vmatprep.mubr.msk.bf16.mxu0 %vm799_vm2, %v739_v10  ;;  %v931_v19 = vsel %vm799_vm2, %v2432_v17, 0  ;;  %v741_v22 = vld [vmem:[#allocation5 + $0x10] sm:$0xff]  ;;  %v742_v24 = vld [vmem:[#allocation5 + $0x18] sm:$0xff]  ;;  %v1047_v6 = vld [vmem:[#allocation2] sm:$0xff] }
  0x72   : > { %v743_v11 = vld [vmem:[#allocation5 + $0x20] sm:$0xff]  ;;  %v744_v21 = vld [vmem:[#allocation5 + $0x28] sm:$0xff]  ;;  %2424 = vset.pattern.permute.xlu0 %v2649_v52  ;;  %v2977_v59 = vld [vmem:[#allocation2 + $0x10] sm:$0xff] }
  0x73   : > { %2282 = vmatprep.mubr.msk.bf16.mxu1 %vm799_vm2, %v743_v11  ;;  %v745_v23 = vld [vmem:[#allocation5 + $0x30] sm:$0xff]  ;;  %v746_v25 = vld [vmem:[#allocation5 + $0x38] sm:$0xff]  ;;  %v2979_v61 = vld [vmem:[#allocation2 + $0x40] sm:$0xff] }
  0x74   : > { %v2984_v0 = vld [vmem:[#allocation2 + $0x50] sm:$0xff]  ;;  %v2992_v3 = vld [vmem:[#allocation2 + $0x18] sm:$0xff] }
  0x77   : > { %2261 = vmatpush3.bf16.xpose.msra.mxu0 %v816_v8 }
  0x78   : > { %2277 = vmatpush3.bf16.xpose.msra.mxu1 %v925_v12  ;;  %2324 = vmatprep.subr.msk.bf16.mxu0 %vm799_vm2, %v2429_v9  ;;  %v3005_v9 = vld [vmem:[#allocation2 + $0x58] sm:$0xff]  ;;  %v3009_v12 = vld [vmem:[#allocation2 + $0x8] sm:$0xff] }
  0x79   : > { %2328 = vmatprep.subr.msk.bf16.mxu1 %vm799_vm2, %v2430_v13 }
  0x7f   : > { %2263 = vmatpush3.bf16.xpose.msra.mxu0 %v819_v14 }
  0x80   : > { %2279 = vmatpush3.bf16.xpose.msra.mxu1 %v928_v16  ;;  %2325 = vmatprep.subr.msk.bf16.mxu0 %vm799_vm2, %v2431_v15  ;;  %v3016_v15 = vld [vmem:[#allocation2 + $0x48] sm:$0xff] }
  0x81   : > { %2329 = vmatprep.subr.msk.bf16.mxu1 %vm799_vm2, %v2432_v17 }
  0x87   : > { %2265 = vmatpush3.bf16.xpose.msra.mxu0 %v822_v18  ;;  %v3023_v18 = vld [vmem:[#allocation2 + $0x30] sm:$0xff] }
  0x88   : > { %2281 = vmatpush3.bf16.xpose.msra.mxu1 %v931_v19 }
  0x8e   : > { %2267 = vmatmul.mubr.msk.bf16.vlgmr.msra.gmra.mrb[0].mxu0 %vm799_vm2, %v740_v20 }
  0x8f   : > { %2283 = vmatmul.mubr.msk.bf16.vlgmr.msra.gmra.mrb[0].mxu1 %vm799_vm2, %v744_v21  ;;  %2270 = vmatprep.mubr.msk.bf16.mxu0 %vm799_vm2, %v741_v22  ;;  %v3031_v21 = vld [vmem:[#allocation2 + $0x38] sm:$0xff] }
  0x90   : > { %2286 = vmatprep.mubr.msk.bf16.mxu1 %vm799_vm2, %v745_v23 }
  0x96   : > { %2271 = vmatmul.mubr.msk.bf16.gmra.mrb[4].mxu0 %vm799_vm2, %v742_v24  ;;  %v3038_v24 = vld [vmem:[#allocation2 + $0x20] sm:$0xff] }
  0x97   : > { %2287 = vmatmul.mubr.msk.bf16.gmra.mrb[4].mxu1 %vm799_vm2, %v746_v25 }
 0x161   : > { %v2913_v26 = vpop.f32.mrb[0].mxu0 }
 0x162   : > { %v2915_v27 = vpop.f32.mrb[0].mxu1  ;;  %v2917_v28 = vpop.f32.mrb[1].mxu0  ;;  %v1005_v29 = vsel %vm998_vm3, %v2913_v26, -inf }
 0x163   : > { %v2921_v30 = vpop.f32.mrb[1].mxu1  ;;  %1006 = vmax.xlane.f32.xlu0 %v1005_v29  ;;  %v2923_v31 = vpop.f32.mrb[2].mxu0  ;;  %v1029_v35 = vsel %vm998_vm3, %v2915_v27, -inf  ;;  %v999_v39 = vsel %vm998_vm3, %v2917_v28, -inf }
 0x164   : > { %v1023_v32 = vsel %vm998_vm3, %v2921_v30, -inf  ;;  %v2927_v33 = vpop.f32.mrb[3].mxu0  ;;  %v2929_v34 = vpop.f32.mrb[2].mxu1  ;;  %v1008_v37 = vsel %vm998_vm3, %v2923_v31, -inf }
 0x165   : > { %1024 = vmax.xlane.f32.xlu1 %v1023_v32  ;;  %v2933_v36 = vpop.f32.mrb[3].mxu1  ;;  %v1032_v44 = vsel %vm998_vm3, %v2929_v34, -inf  ;;  %v1002_v48 = vsel %vm998_vm3, %v2927_v33, -inf  ;;  %v3046_v32 = vld [vmem:[#allocation2 + $0x78] sm:$0xff] }
 0x166   : > { %v1026_v49 = vsel %vm998_vm3, %v2933_v36, -inf }
 0x167   : > { %1030 = vmax.xlane.f32.xlu0 %v1029_v35 }
 0x169   : > { %1009 = vmax.xlane.f32.xlu1 %v1008_v37  ;;  %v2937_v38 = vpop.f32.mrb[4].mxu0 }
 0x16a   : > { %v2941_v40 = vpop.f32.mrb[5].mxu0  ;;  %v2943_v41 = vpop.f32.mrb[4].mxu1  ;;  %v1017_v50 = vsel %vm998_vm3, %v2937_v38, -inf }
 0x16b   : > { %1000 = vmax.xlane.f32.xlu0 %v999_v39  ;;  %v2945_v42 = vpop.f32.mrb[6].mxu0  ;;  %v2947_v43 = vpop.f32.mrb[5].mxu1  ;;  %v1011_v53 = vsel %vm998_vm3, %v2941_v40, -inf  ;;  %v1041_v57 = vsel %vm998_vm3, %v2943_v41, -inf }
 0x16c   : > { %v2951_v45 = vpop.f32.mrb[6].mxu1  ;;  %v2953_v46 = vpop.f32.mrb[7].mxu0  ;;  %v1020_v51 = vsel %vm998_vm3, %v2945_v42, -inf  ;;  %v1035_v55 = vsel %vm998_vm3, %v2947_v43, -inf }
 0x16d   : > { %1033 = vmax.xlane.f32.xlu1 %v1032_v44  ;;  %v2955_v47 = vpop.f32.mrb[7].mxu1  ;;  %v1044_v54 = vsel %vm998_vm3, %v2951_v45, -inf  ;;  %v1014_v56 = vsel %vm998_vm3, %v2953_v46, -inf  ;;  %v3054_v44 = vld [vmem:[#allocation2 + $0x60] sm:$0xff] }
 0x16e   : > { %v1038_v58 = vsel %vm998_vm3, %v2955_v47, -inf }
 0x16f   : > { %1003 = vmax.xlane.f32.xlu0 %v1002_v48 }
 0x171   : > { %1027 = vmax.xlane.f32.xlu1 %v1026_v49 }
 0x173   : > { %1018 = vmax.xlane.f32.xlu0 %v1017_v50  ;;  %v3062_v50 = vld [vmem:[#allocation2 + $0x28] sm:$0xff] }
 0x175   : > { %1021 = vmax.xlane.f32.xlu1 %v1020_v51  ;;  %v2433_v51 = vld [vmem:[%s2806_s12] sm:$0xff]  }
 0x176   : > { %2290 = vmatprep.subr.bf16.mxu0 %v2433_v51 }
 0x177   : > { %1012 = vmax.xlane.f32.xlu0 %v1011_v53  ;;  %2291 = vmatpush3.bf16.msra.mxu0 %v2433_v51 }
 0x179   : > { %1045 = vmax.xlane.f32.xlu1 %v1044_v54 }
 0x17b   : > { %1036 = vmax.xlane.f32.xlu0 %v1035_v55 }
 0x17d   : > { %1015 = vmax.xlane.f32.xlu1 %v1014_v56 }
 0x17f   : > { %1042 = vmax.xlane.f32.xlu0 %v1041_v57  ;;  %v3074_v57 = vld [vmem:[#allocation2 + $0x70] sm:$0xff] }
 0x181   : > { %1039 = vmax.xlane.f32.xlu1 %v1038_v58 }
 0x1f0   : > { %v1007_v60 = vpop.xlane.xlu0 %1006 }
 0x1f1   : > { %v2982_v62 = vmax.f32 %v2977_v59, %v1007_v60 }
 0x1f2   : > { %v1025_v63 = vpop.xlane.xlu1 %1024 }
 0x1f3   : > { %1724 = vst.msk [vmem:[#allocation2 + $0x10] sm:$0xff] %vm1351_vm4, %v2982_v62  ;;  %v2989_v1 = vmax.f32 %v2979_v61, %v1025_v63  ;;  %1139 = vperm.xlu1 %2423, %v2982_v62   ;;  %v1081_v60 = vsub.f32 %v2977_v59, %v2982_v62 }
 0x1f4   : > { %v1031_v2 = vpop.xlane.xlu0 %1030 }
 0x1f5   : > { %1730 = vst.msk [vmem:[#allocation2 + $0x40] sm:$0xff] %vm1351_vm4, %v2989_v1  ;;  %v2997_v4 = vmax.f32 %v2984_v0, %v1031_v2  ;;  %v3084_v2 = vld [vmem:[#allocation2 + $0x68] sm:$0xff] }
 0x1f6   : > { %v1010_v5 = vpop.xlane.xlu1 %1009 }
 0x1f7   : > { %1732 = vst.msk [vmem:[#allocation2 + $0x50] sm:$0xff] %vm1351_vm4, %v2997_v4  ;;  %v3002_v7 = vmax.f32 %v2992_v3, %v1010_v5  ;;  %1179 = vperm.xlu1 %2423, %v2997_v4   ;;  %v2435_v5 = vld [vmem:[%s2806_s12 + $0x20] sm:$0xff]  }
 0x1f8   : > { %v1001_v8 = vpop.xlane.xlu0 %1000  ;;  %2306 = vmatprep.subr.bf16.mxu1 %v2435_v5 }
 0x1f9   : > { %1725 = vst.msk [vmem:[#allocation2 + $0x18] sm:$0xff] %vm1351_vm4, %v3002_v7  ;;  %v1063_v10 = vmax.f32 %v1047_v6, %v1001_v8  ;;  %v1082_v54 = vsub.f32 %v2992_v3, %v3002_v7  ;;  %v2434_v3 = vld [vmem:[%s2806_s12 + $0x8] sm:$0xff]   ;;  %2307 = vmatpush3.bf16.msra.mxu1 %v2435_v5 }
 0x1fa   : > { %v1034_v11 = vpop.xlane.xlu1 %1033  ;;  %2292 = vmatprep.subr.bf16.mxu0 %v2434_v3 }
 0x1fb   : > { %1722 = vst.msk [vmem:[#allocation2] sm:$0xff] %vm1351_vm4, %v1063_v10  ;;  %v3013_v13 = vmax.f32 %v3005_v9, %v1034_v11  ;;  %1129 = vperm.xlu0 %2424, %v1063_v10   ;;  %1169 = vperm.xlu1 %2423, %v2989_v1   ;;  %v1079_v37 = vsub.f32 %v1047_v6, %v1063_v10  ;;  %v1099_v11 = vmul.f32 1.442695, %v1081_v60 }
 0x1fc   : > { %v1004_v14 = vpop.xlane.xlu0 %1003  ;;  %2293 = vmatpush3.bf16.msra.mxu0 %v2434_v3 }
 0x1fd   : > { %1733 = vst.msk [vmem:[#allocation2 + $0x58] sm:$0xff] %vm1351_vm4, %v3013_v13  ;;  %v3021_v16 = vmax.f32 %v3009_v12, %v1004_v14  ;;  %v1095_v55 = vmul.f32 1.442695, %v1079_v37  ;;  %v1090_v59 = vsub.f32 %v3005_v9, %v3013_v13  ;;  %v1089_v14 = vsub.f32 %v2984_v0, %v2997_v4  ;;  %v2436_v9 = vld [vmem:[%s2806_s12 + $0x10] sm:$0xff]  }
 0x1fe   : > { %v1028_v17 = vpop.xlane.xlu1 %1027  ;;  %2294 = vmatprep.subr.bf16.mxu0 %v2436_v9  ;;  %v1087_v0 = vsub.f32 %v2979_v61, %v2989_v1 }
 0x1ff   : > { %1723 = vst.msk [vmem:[#allocation2 + $0x8] sm:$0xff] %vm1351_vm4, %v3021_v16  ;;  %v3028_v19 = vmax.f32 %v3016_v15, %v1028_v17  ;;  %1144 = vperm.xlu1 %2423, %v3002_v7   ;;  %v1101_v7 = vmul.f32 1.442695, %v1082_v54  ;;  %2441 = vpow2.f32 %v1095_v55  ;;  %v1117_v17 = vmul.f32 1.442695, %v1090_v59 }
 0x200   : > { %v1019_v20 = vpop.xlane.xlu0 %1018  ;;  %2295 = vmatpush3.bf16.msra.mxu0 %v2436_v9  ;;  %v1115_v4 = vmul.f32 1.442695, %v1089_v14  ;;  %v1111_v61 = vmul.f32 1.442695, %v1087_v0  ;;  %v1080_v1 = vsub.f32 %v3009_v12, %v3021_v16 }
 0x201   : > { %1731 = vst.msk [vmem:[#allocation2 + $0x48] sm:$0xff] %vm1351_vm4, %v3028_v19  ;;  %v3036_v22 = vmax.f32 %v3023_v18, %v1019_v20  ;;  %2443 = vpow2.f32 %v1101_v7  ;;  %v1088_v20 = vsub.f32 %v3016_v15, %v3028_v19 }
 0x202   : > { %v1022_v23 = vpop.xlane.xlu1 %1021  ;;  %2445 = vpow2.f32 %v1099_v11  ;;  %v1097_v51 = vmul.f32 1.442695, %v1080_v1 }
 0x203   : > { %1728 = vst.msk [vmem:[#allocation2 + $0x30] sm:$0xff] %vm1351_vm4, %v3036_v22  ;;  %v3043_v25 = vmax.f32 %v3031_v21, %v1022_v23  ;;  %1184 = vperm.xlu1 %2423, %v3013_v13   ;;  %v2437_v13 = vld [vmem:[%s2806_s12 + $0x28] sm:$0xff]   ;;  %v2438_v23 = vld [vmem:[%s2806_s12 + $0x18] sm:$0xff]   ;;  %2447 = vpow2.f32 %v1117_v17  ;;  %v1113_v37 = vmul.f32 1.442695, %v1088_v20  ;;  %v1085_v54 = vsub.f32 %v3023_v18, %v3036_v22 }
 0x204   : > { %v1013_v29 = vpop.xlane.xlu0 %1012  ;;  %2308 = vmatprep.subr.bf16.mxu1 %v2437_v13  ;;  %2296 = vmatprep.subr.bf16.mxu0 %v2438_v23  ;;  %2449 = vpow2.f32 %v1115_v4 }
 0x205   : > { %1729 = vst.msk [vmem:[#allocation2 + $0x38] sm:$0xff] %vm1351_vm4, %v3043_v25  ;;  %v3051_v35 = vmax.f32 %v3038_v24, %v1013_v29  ;;  %1164 = vperm.xlu0 %2424, %v3043_v25   ;;  %2309 = vmatpush3.bf16.msra.mxu1 %v2437_v13  ;;  %v2439_v29 = vld [vmem:[%s2806_s12 + $0x30] sm:$0xff]   ;;  %v1086_v15 = vsub.f32 %v3031_v21, %v3043_v25  ;;  %2451 = vpow2.f32 %v1113_v37 }
 0x206   : > { %v1046_v39 = vpop.xlane.xlu1 %1045  ;;  %2310 = vmatprep.subr.bf16.mxu1 %v2439_v29  ;;  %2297 = vmatpush3.bf16.msra.mxu0 %v2438_v23  ;;  %2453 = vpow2.f32 %v1111_v61 }
 0x207   : > { %1726 = vst.msk [vmem:[#allocation2 + $0x20] sm:$0xff] %vm1351_vm4, %v3051_v35  ;;  %v3059_v48 = vmax.f32 %v3046_v32, %v1046_v39  ;;  %1134 = vperm.xlu1 %2423, %v3021_v16   ;;  %v2440_v39 = vld [vmem:[%s2806_s12 + $0x38] sm:$0xff]  }
 0x208   : > { %v1037_v49 = vpop.xlane.xlu0 %1036 }
 0x209   : > { %v1094_v52 = vsub.f32 %v3046_v32, %v3059_v48  ;;  %1737 = vst.msk [vmem:[#allocation2 + $0x78] sm:$0xff] %vm1351_vm4, %v3059_v48  ;;  %v3070_v53 = vmax.f32 %v3054_v44, %v1037_v49  ;;  %2311 = vmatpush3.bf16.msra.mxu1 %v2439_v29  ;;  %v1109_v49 = vmul.f32 1.442695, %v1086_v15 }
 0x20a   : > { %v1016_v56 = vpop.xlane.xlu1 %1015  ;;  %2312 = vmatprep.subr.bf16.mxu1 %v2440_v39 }
 0x20b   : > { %1734 = vst.msk [vmem:[#allocation2 + $0x60] sm:$0xff] %vm1351_vm4, %v3070_v53  ;;  %v3079_v58 = vmax.f32 %v3062_v50, %v1016_v56  ;;  %1174 = vperm.xlu1 %2423, %v3028_v19   ;;  %v3118_v19 = vpop.eup %2441  ;;  %2455 = vpow2.f32 %v1109_v49  ;;  %v1107_v56 = vmul.f32 1.442695, %v1085_v54 }
 0x20c   : > { %v1043_v63 = vpop.xlane.xlu0 %1042  ;;  %v3127_v25 = vpop.eup %2443  ;;  %2457 = vpow2.f32 %v1097_v51 }
 0x20d   : > { %1727 = vst.msk [vmem:[#allocation2 + $0x28] sm:$0xff] %vm1351_vm4, %v3079_v58  ;;  %v3091_v6 = vmax.f32 %v3074_v57, %v1043_v63  ;;  %1154 = vperm.xlu0 %2424, %v3079_v58   ;;  %v1084_v21 = vsub.f32 %v3062_v50, %v3079_v58  ;;  %2313 = vmatpush3.bf16.msra.mxu1 %v2440_v39  ;;  %v3132_v12 = vpop.eup %2445 }
 0x20e   : > { %v1040_v62 = vpop.xlane.xlu1 %1039  ;;  %v3136_v50 = vpop.eup %2447  ;;  %v1083_v58 = vsub.f32 %v3038_v24, %v3051_v35 }
 0x20f   : > { %v1093_v8 = vsub.f32 %v3074_v57, %v3091_v6  ;;  %1736 = vst.msk [vmem:[#allocation2 + $0x70] sm:$0xff] %vm1351_vm4, %v3091_v6  ;;  %v1076_v10 = vmax.f32 %v3084_v2, %v1040_v62  ;;  %1159 = vperm.xlu1 %2423, %v3036_v22   ;;  %v1105_v16 = vmul.f32 1.442695, %v1084_v21  ;;  %v3141_v18 = vpop.eup %2449 }
 0x210   : > { %v3144_v60 = vpop.eup %2451  ;;  %v1103_v63 = vmul.f32 1.442695, %v1083_v58 }
 0x211   : > { %1735 = vst.msk [vmem:[#allocation2 + $0x68] sm:$0xff] %vm1351_vm4, %v1076_v10  ;;  %1194 = vperm.xlu0 %2424, %v1076_v10   ;;  %v1092_v55 = vsub.f32 %v3084_v2, %v1076_v10  ;;  %2459 = vpow2.f32 %v1105_v16  ;;  %v1091_v2 = vsub.f32 %v3054_v44, %v3070_v53  ;;  %v3149_v3 = vpop.eup %2453 }
 0x212   : > { %2461 = vpow2.f32 %v1107_v56 }
 0x213   : > { %1149 = vperm.xlu1 %2423, %v3051_v35   ;;  %v1121_v22 = vmul.f32 1.442695, %v1092_v55  ;;  %v1119_v35 = vmul.f32 1.442695, %v1091_v2 }
 0x215   : > { %1204 = vperm.xlu0 %2424, %v3059_v48   ;;  %2463 = vpow2.f32 %v1121_v22  ;;  %v3152_v24 = vpop.eup %2455 }
 0x216   : > { %2465 = vpow2.f32 %v1103_v63  ;;  %v3155_v5 = vpop.eup %2457 }
 0x217   : > { %1189 = vperm.xlu1 %2423, %v3070_v53   ;;  %2467 = vpow2.f32 %v1119_v35 }
 0x219   : > { %1386 = vperm.xlu0 %2424, %v3118_v19  }
 0x21b   : > { %1199 = vperm.xlu1 %2423, %v3091_v6   ;;  %v3158_v7 = vpop.eup %2459 }
 0x21c   : > { %v3161_v44 = vpop.eup %2461 }
 0x21d   : > { %1401 = vperm.xlu0 %2424, %v3127_v25  }
 0x21f   : > { %1396 = vperm.xlu1 %2423, %v3132_v12   ;;  %v3164_v53 = vpop.eup %2463 }
 0x220   : > { %v3167_v59 = vpop.eup %2465 }
 0x221   : > { %1441 = vperm.xlu0 %2424, %v3136_v50   ;;  %v3170_v62 = vpop.eup %2467 }
 0x223   : > { %1436 = vperm.xlu1 %2423, %v3141_v18  }
 0x225   : > { %1431 = vperm.xlu0 %2424, %v3144_v60  }
 0x227   : > { %1426 = vperm.xlu1 %2423, %v3149_v3  }
 0x229   : > { %1421 = vperm.xlu0 %2424, %v3152_v24  }
 0x22b   : > { %1391 = vperm.xlu1 %2423, %v3155_v5  }
 0x22d   : > { %1411 = vperm.xlu0 %2424, %v3158_v7  }
 0x22f   : > { %1416 = vperm.xlu1 %2423, %v3161_v44  }
 0x231   : > { %1451 = vperm.xlu0 %2424, %v3164_v53  }
 0x233   : > { %1406 = vperm.xlu1 %2423, %v3167_v59  }
 0x237   : > { %1446 = vperm.xlu1 %2423, %v3170_v62  }
 0x272   : > { %v1140_v10 = vpop.permute.xlu1 %1139 }
 0x273   : > { %v1209_v11 = vsub.f32 %v2913_v26, %v1140_v10 }
 0x275   : > { %v1227_v14 = vmul.f32 1.442695, %v1209_v11 }
 0x276   : > { %v1180_v9 = vpop.permute.xlu1 %1179 }
 0x277   : > { %2469 = vpow2.f32 %v1227_v14  ;;  %v1217_v13 = vsub.f32 %v2915_v27, %v1180_v9 }
 0x279   : > { %v1243_v17 = vmul.f32 1.442695, %v1217_v13 }
 0x27a   : > { %v1130_v20 = vpop.permute.xlu0 %1129  ;;  %v1170_v0 = vpop.permute.xlu1 %1169 }
 0x27b   : > { %2471 = vpow2.f32 %v1243_v17  ;;  %v1207_v4 = vsub.f32 %v2917_v28, %v1130_v20  ;;  %v1215_v23 = vsub.f32 %v2921_v30, %v1170_v0 }
 0x27d   : > { %v1223_v29 = vmul.f32 1.442695, %v1207_v4  ;;  %v1239_v37 = vmul.f32 1.442695, %v1215_v23 }
 0x27e   : > { %v1145_v15 = vpop.permute.xlu1 %1144 }
 0x27f   : > { %2473 = vpow2.f32 %v1223_v29  ;;  %v1210_v61 = vsub.f32 %v2923_v31, %v1145_v15 }
 0x280   : > { %2475 = vpow2.f32 %v1239_v37 }
 0x281   : > { %v3178_v26 = vpop.eup %2469  ;;  %v1229_v1 = vmul.f32 1.442695, %v1210_v61 }
 0x282   : > { %v1185_v39 = vpop.permute.xlu1 %1184  ;;  %v1293_v27 = vsel %vm998_vm3, %v3178_v26, 0.0 }
 0x283   : > { %2477 = vpow2.f32 %v1229_v1  ;;  %v1218_v49 = vsub.f32 %v2929_v34, %v1185_v39  ;;  %1294 = vadd.xlane.f32.xlu0 %v1293_v27 }
 0x284   : > { %v1165_v21 = vpop.permute.xlu0 %1164 }
 0x285   : > { %v3183_v28 = vpop.eup %2471  ;;  %v1245_v30 = vmul.f32 1.442695, %v1218_v49  ;;  %v1214_v55 = vsub.f32 %v2945_v42, %v1165_v21 }
 0x286   : > { %v1135_v51 = vpop.permute.xlu1 %1134  ;;  %v1317_v31 = vsel %vm998_vm3, %v3183_v28, 0.0 }
 0x287   : > { %2479 = vpow2.f32 %v1245_v30  ;;  %v1208_v54 = vsub.f32 %v2927_v33, %v1135_v51  ;;  %1318 = vadd.xlane.f32.xlu0 %v1317_v31  ;;  %v1237_v11 = vmul.f32 1.442695, %v1214_v55 }
 0x289   : > { %v2474_v16 = vpop.eup %2473  ;;  %v1225_v56 = vmul.f32 1.442695, %v1208_v54 }
 0x28a   : > { %v2476_v58 = vpop.eup %2475  ;;  %v1175_v22 = vpop.permute.xlu1 %1174  ;;  %v1287_v34 = vsel %vm998_vm3, %v2474_v16, 0.0 }
 0x28b   : > { %2481 = vpow2.f32 %v1225_v56  ;;  %v1216_v63 = vsub.f32 %v2933_v36, %v1175_v22  ;;  %1288 = vadd.xlane.f32.xlu1 %v1287_v34  ;;  %v1311_v2 = vsel %vm998_vm3, %v2476_v58, 0.0 }
 0x28c   : > { %v1155_v35 = vpop.permute.xlu0 %1154  ;;  %1312 = vadd.xlane.f32.xlu0 %v1311_v2 }
 0x28d   : > { %v2478_v10 = vpop.eup %2477  ;;  %v1241_v33 = vmul.f32 1.442695, %v1216_v63  ;;  %v1212_v42 = vsub.f32 %v2953_v46, %v1155_v35 }
 0x28e   : > { %v1481_v14 = vpack.c.bf16 %v2478_v10, %v3178_v26  ;;  %v1160_v9 = vpop.permute.xlu1 %1159  ;;  %v1296_v13 = vsel %vm998_vm3, %v2478_v10, 0.0 }
 0x28f   : > { %2483 = vpow2.f32 %v1241_v33  ;;  %v1213_v17 = vsub.f32 %v2937_v38, %v1160_v9  ;;  %1297 = vadd.xlane.f32.xlu1 %v1296_v13  ;;  %v1233_v23 = vmul.f32 1.442695, %v1212_v42 }
 0x290   : > { %v1195_v36 = vpop.permute.xlu0 %1194  ;;  %2485 = vpow2.f32 %v1237_v11 }
 0x291   : > { %v2480_v20 = vpop.eup %2479  ;;  %v1235_v0 = vmul.f32 1.442695, %v1213_v17  ;;  %v1220_v29 = vsub.f32 %v2955_v47, %v1195_v36 }
 0x292   : > { %v1485_v4 = vpack.c.bf16 %v2480_v20, %v3183_v28  ;;  %v1150_v37 = vpop.permute.xlu1 %1149  ;;  %v1320_v15 = vsel %vm998_vm3, %v2480_v20, 0.0  ;;  %v1123_v20 = vmul.f32 1.442695, %v1093_v8 }
 0x293   : > { %2487 = vpow2.f32 %v1235_v0  ;;  %v1211_v46 = vsub.f32 %v2941_v40, %v1150_v37  ;;  %1321 = vadd.xlane.f32.xlu1 %v1320_v15  ;;  %v1249_v39 = vmul.f32 1.442695, %v1220_v29 }
 0x294   : > { %v1205_v61 = vpop.permute.xlu0 %1204  ;;  %2489 = vpow2.f32 %v1233_v23 }
 0x295   : > { %v2482_v26 = vpop.eup %2481  ;;  %v1231_v38 = vmul.f32 1.442695, %v1211_v46  ;;  %v1222_v1 = vsub.f32 %v2951_v45, %v1205_v61 }
 0x296   : > { %v1190_v27 = vpop.permute.xlu1 %1189  ;;  %v1290_v49 = vsel %vm998_vm3, %v2482_v26, 0.0  ;;  %v1480_v28 = vpack.c.bf16 %v2482_v26, %v2474_v16 }
 0x297   : > { %2491 = vpow2.f32 %v1231_v38  ;;  %v1253_v47 = vmul.f32 1.442695, %v1222_v1  ;;  %v1219_v30 = vsub.f32 %v2947_v43, %v1190_v27  ;;  %1291 = vadd.xlane.f32.xlu0 %v1290_v49  ;;  %v1257_v1 = vld [vmem:[#allocation3 + $0x10] sm:$0xff] }
 0x298   : > { %2298 = vmatprep.mubr.msk.bf16.mxu0 %vm998_vm3, %v1480_v28  ;;  %v3233_v57 = vpop.permute.xlu0 %1386  ;;  %v1273_v27 = vmul.f32 %v3132_v12, %v1257_v1  ;;  %v1265_v28 = vld [vmem:[#allocation3 + $0x50] sm:$0xff] }
 0x299   : > { %v2484_v40 = vpop.eup %2483  ;;  %2493 = vpow2.f32 %v1253_v47  ;;  %v1247_v21 = vmul.f32 1.442695, %v1219_v30  ;;  %2299 = vmatmul.mubr.msk.bf16.vlgmr.msra.gmra.mrb[8].mxu0 %vm998_vm3, %v1481_v14  ;;  %v1281_v30 = vmul.f32 %v3141_v18, %v1265_v28  ;;  %v1269_v28 = vld [vmem:[#allocation3 + $0x70] sm:$0xff] }
 0x29a   : > { %2495 = vpow2.f32 %v1249_v39  ;;  %v1200_v45 = vpop.permute.xlu1 %1199  ;;  %v1314_v51 = vsel %vm998_vm3, %v2484_v40, 0.0  ;;  %v1484_v31 = vpack.c.bf16 %v2484_v40, %v2476_v58  ;;  %v2486_v54 = vpop.eup %2485 }
 0x29b   : > { %2497 = vpow2.f32 %v1247_v21  ;;  %v1221_v16 = vsub.f32 %v2943_v41, %v1200_v45  ;;  %1315 = vadd.xlane.f32.xlu1 %v1314_v51  ;;  %v1308_v56 = vsel %vm998_vm3, %v2486_v54, 0.0  ;;  %v1255_v45 = vld [vmem:[#allocation3] sm:$0xff] }
 0x29c   : > { %2314 = vmatprep.mubr.msk.bf16.mxu1 %vm998_vm3, %v1484_v31  ;;  %v3235_v6 = vpop.permute.xlu0 %1401  ;;  %v1263_v31 = vld [vmem:[#allocation3 + $0x40] sm:$0xff] }
 0x29d   : > { %v2488_v43 = vpop.eup %2487  ;;  %v1251_v55 = vmul.f32 1.442695, %v1221_v16  ;;  %2315 = vmatmul.mubr.msk.bf16.vlgmr.msra.gmra.mrb[8].mxu1 %vm998_vm3, %v1485_v4  ;;  %v1125_v4 = vmul.f32 1.442695, %v1094_v52  ;;  %v1279_v16 = vmul.f32 %v3149_v3, %v1263_v31  ;;  %v1256_v3 = vld [vmem:[#allocation3 + $0x8] sm:$0xff] }
 0x29e   : > { %v1305_v22 = vsel %vm998_vm3, %v2488_v43, 0.0  ;;  %v1483_v34 = vpack.c.bf16 %v2486_v54, %v2488_v43  ;;  %v2490_v58 = vpop.eup %2489  ;;  %v3237_v8 = vpop.permute.xlu1 %1396  ;;  %v1271_v54 = vmul.f32 %v3118_v19, %v1255_v45  ;;  %v1258_v43 = vld [vmem:[#allocation3 + $0x18] sm:$0xff] }
 0x29f   : > { %2499 = vpow2.f32 %v1251_v55  ;;  %1309 = vadd.xlane.f32.xlu1 %v1308_v56  ;;  %1306 = vadd.xlane.f32.xlu0 %v1305_v22  ;;  %v1302_v14 = vsel %vm998_vm3, %v2490_v58, 0.0  ;;  %v1274_v18 = vmul.f32 %v3127_v25, %v1258_v43 }
 0x2a0   : > { %2501 = vpow2.f32 %v1123_v20  ;;  %v3239_v37 = vpop.permute.xlu0 %1441 }
 0x2a1   : > { %v2492_v63 = vpop.eup %2491  ;;  %2503 = vpow2.f32 %v1125_v4  ;;  %v1270_v4 = vld [vmem:[#allocation3 + $0x78] sm:$0xff] }
 0x2a2   : > { %v1482_v2 = vpack.c.bf16 %v2490_v58, %v2492_v63  ;;  %v1299_v36 = vsel %vm998_vm3, %v2492_v63, 0.0  ;;  %v3241_v15 = vpop.permute.xlu1 %1436  ;;  %v1266_v58 = vld [vmem:[#allocation3 + $0x58] sm:$0xff] }
 0x2a3   : > { %v2494_v35 = vpop.eup %2493  ;;  %v1282_v19 = vmul.f32 %v3136_v50, %v1266_v58 }
 0x2a4   : > { %v2496_v41 = vpop.eup %2495  ;;  %v1332_v10 = vsel %vm998_vm3, %v2494_v35, 0.0  ;;  %2302 = vmatprep.mubr.msk.bf16.mxu0 %vm998_vm3, %v1482_v2  ;;  %v3243_v32 = vpop.permute.xlu0 %1431 }
 0x2a5   : > { %v2498_v11 = vpop.eup %2497  ;;  %1333 = vadd.xlane.f32.xlu1 %v1332_v10  ;;  %2303 = vmatmul.mubr.msk.bf16.gmra.mrb[12].mxu0 %vm998_vm3, %v1483_v34  ;;  %v1326_v17 = vsel %vm998_vm3, %v2496_v41, 0.0 }
 0x2a6   : > { %v1486_v33 = vpack.c.bf16 %v2496_v41, %v2498_v11  ;;  %v1323_v0 = vsel %vm998_vm3, %v2498_v11, 0.0  ;;  %v3245_v48 = vpop.permute.xlu1 %1426  ;;  %v1272_v41 = vmul.f32 %v3155_v5, %v1256_v3  ;;  %v1264_v11 = vld [vmem:[#allocation3 + $0x48] sm:$0xff] }
 0x2a7   : > { %v1280_v25 = vmul.f32 %v3144_v60, %v1264_v11 }
 0x2a8   : > { %2318 = vmatprep.mubr.msk.bf16.mxu1 %vm998_vm3, %v1486_v33  ;;  %v3247_v52 = vpop.permute.xlu0 %1421 }
 0x2a9   : > { %v2500_v42 = vpop.eup %2499  ;;  %1303 = vadd.xlane.f32.xlu1 %v1302_v14 }
 0x2aa   : > { %v1329_v9 = vsel %vm998_vm3, %v2500_v42, 0.0  ;;  %v1487_v13 = vpack.c.bf16 %v2494_v35, %v2500_v42  ;;  %v3227_v23 = vpop.eup %2501  ;;  %v3249_v46 = vpop.permute.xlu1 %1391  ;;  %v1261_v42 = vld [vmem:[#allocation3 + $0x30] sm:$0xff] }
 0x2ab   : > { %1330 = vadd.xlane.f32.xlu0 %v1329_v9  ;;  %v3230_v29 = vpop.eup %2503  ;;  %v1262_v9 = vld [vmem:[#allocation3 + $0x38] sm:$0xff]  ;;  %v1277_v50 = vmul.f32 %v3161_v44, %v1261_v42  ;;  %v1377_v42 = vld [vmem:[#allocation4 + $0x48] sm:$0xff] }
 0x2ac   : > { %2319 = vmatmul.mubr.msk.bf16.gmra.mrb[12].mxu1 %vm998_vm3, %v1487_v13  ;;  %v3251_v61 = vpop.permute.xlu0 %1411  ;;  %v1286_v60 = vmul.f32 %v3230_v29, %v1270_v4 }
 0x2ad   : > { %1327 = vadd.xlane.f32.xlu1 %v1326_v17  ;;  %v1278_v17 = vmul.f32 %v3152_v24, %v1262_v9 }
 0x2ae   : > { %v3253_v26 = vpop.permute.xlu1 %1416 }
 0x2af   : > { %1300 = vadd.xlane.f32.xlu0 %v1299_v36 }
 0x2b0   : > { %v3255_v38 = vpop.permute.xlu0 %1451 }
 0x2b2   : > { %v3257_v39 = vpop.permute.xlu1 %1406 }
 0x2b3   : > { %1324 = vadd.xlane.f32.xlu0 %v1323_v0 }
 0x2b6   : > { %v3262_v40 = vpop.permute.xlu1 %1446 }
 0x2be   : > { %1456 = vperm.xlu1 %2423, %v3227_v23  }
 0x2c9   : > { %1461 = vperm.xlu0 %2424, %v3230_v29  }
 0x310   : > { %v1295_v49 = vpop.xlane.xlu0 %1294 }
 0x311   : > { %v1337_v47 = vadd.f32 %v1295_v49, %v1273_v27  ;;  %v1260_v27 = vld [vmem:[#allocation3 + $0x28] sm:$0xff] }
 0x312   : > { %v1276_v44 = vmul.f32 %v3158_v7, %v1260_v27  ;;  %v1267_v7 = vld [vmem:[#allocation3 + $0x60] sm:$0xff] }
 0x313   : > { %1354 = vst.msk [vmem:[#allocation3 + $0x10] sm:$0xff] %vm1351_vm4, %v1337_v47  ;;  %v1268_v47 = vld [vmem:[#allocation3 + $0x68] sm:$0xff] }
 0x314   : > { %v1319_v21 = vpop.xlane.xlu0 %1318  ;;  %v1284_v29 = vmul.f32 %v3164_v53, %v1268_v47  ;;  %v1370_v53 = vld [vmem:[#allocation4 + $0x10] sm:$0xff] }
 0x315   : > { %v1345_v51 = vadd.f32 %v1319_v21, %v1281_v30  ;;  %v1285_v21 = vmul.f32 %v3227_v23, %v1269_v28  ;;  %v1283_v23 = vmul.f32 %v3170_v62, %v1267_v7  ;;  %v1466_v58 = vmul.f32 %v3237_v8, %v1370_v53  ;;  %v1379_v62 = vld [vmem:[#allocation4 + $0x58] sm:$0xff] }
 0x317   : > { %1362 = vst.msk [vmem:[#allocation3 + $0x50] sm:$0xff] %vm1351_vm4, %v1345_v51  ;;  %v1259_v51 = vld [vmem:[#allocation3 + $0x20] sm:$0xff] }
 0x318   : > { %v1289_v12 = vpop.xlane.xlu1 %1288 }
 0x319   : > { %v1313_v55 = vpop.xlane.xlu0 %1312  ;;  %v1335_v56 = vadd.f32 %v1289_v12, %v1271_v54  ;;  %v1275_v12 = vmul.f32 %v3167_v59, %v1259_v51 }
 0x31a   : > { %v1343_v22 = vadd.f32 %v1313_v55, %v1279_v16 }
 0x31b   : > { %1352 = vst.msk [vmem:[#allocation3] sm:$0xff] %vm1351_vm4, %v1335_v56 }
 0x31c   : > { %1360 = vst.msk [vmem:[#allocation3 + $0x40] sm:$0xff] %vm1351_vm4, %v1343_v22  ;;  %v1298_v34 = vpop.xlane.xlu1 %1297 }
 0x31d   : > { %v1338_v63 = vadd.f32 %v1298_v34, %v1274_v18  ;;  %v1368_v18 = vld [vmem:[#allocation4] sm:$0xff]  ;;  %v1371_v34 = vld [vmem:[#allocation4 + $0x18] sm:$0xff] }
 0x31e   : > { %v1464_v59 = vmul.f32 %v3233_v57, %v1368_v18  ;;  %v1467_v3 = vmul.f32 %v3235_v6, %v1371_v34 }
 0x31f   : > { %1355 = vst.msk [vmem:[#allocation3 + $0x18] sm:$0xff] %vm1351_vm4, %v1338_v63  ;;  %v1369_v63 = vld [vmem:[#allocation4 + $0x8] sm:$0xff] }
 0x320   : > { %v1322_v2 = vpop.xlane.xlu1 %1321  ;;  %v1465_v11 = vmul.f32 %v3249_v46, %v1369_v63 }
 0x321   : > { %v1346_v35 = vadd.f32 %v1322_v2, %v1282_v19  ;;  %v1378_v19 = vld [vmem:[#allocation4 + $0x50] sm:$0xff] }
 0x323   : > { %1363 = vst.msk [vmem:[#allocation3 + $0x58] sm:$0xff] %vm1351_vm4, %v1346_v35  ;;  %v1376_v35 = vld [vmem:[#allocation4 + $0x40] sm:$0xff] }
 0x324   : > { %v1292_v10 = vpop.xlane.xlu0 %1291  ;;  %v1472_v57 = vmul.f32 %v3245_v48, %v1376_v35  ;;  %v1750_v63 = vld [vmem:[#allocation3 + $0x40] sm:$0xff] (!%p2207_p3) }
 0x325   : > { %v1336_v33 = vadd.f32 %v1292_v10, %v1272_v41 }
 0x327   : > { %1353 = vst.msk [vmem:[#allocation3 + $0x8] sm:$0xff] %vm1351_vm4, %v1336_v33 }
 0x328   : > { %v1316_v14 = vpop.xlane.xlu1 %1315 }
 0x329   : > { %v1344_v13 = vadd.f32 %v1316_v14, %v1280_v25  ;;  %v1474_v14 = vmul.f32 %v3241_v15, %v1378_v19 }
 0x32b   : > { %1361 = vst.msk [vmem:[#allocation3 + $0x48] sm:$0xff] %vm1351_vm4, %v1344_v13 }
 0x32c   : > { %v1307_v36 = vpop.xlane.xlu0 %1306  ;;  %v1310_v20 = vpop.xlane.xlu1 %1309 }
 0x32d   : > { %v1341_v5 = vadd.f32 %v1307_v36, %v1277_v50  ;;  %v1342_v0 = vadd.f32 %v1310_v20, %v1278_v17  ;;  %v1475_v50 = vmul.f32 %v3239_v37, %v1379_v62  ;;  %v1473_v36 = vmul.f32 %v3243_v32, %v1377_v42  ;;  %v1375_v37 = vld [vmem:[#allocation4 + $0x38] sm:$0xff] }
 0x32e   : > { %v1471_v28 = vmul.f32 %v3247_v52, %v1375_v37  ;;  %v1381_v52 = vld [vmem:[#allocation4 + $0x68] sm:$0xff] }
 0x32f   : > { %1358 = vst.msk [vmem:[#allocation3 + $0x30] sm:$0xff] %vm1351_vm4, %v1341_v5  ;;  %1359 = vst.msk [vmem:[#allocation3 + $0x38] sm:$0xff] %vm1351_vm4, %v1342_v0  ;;  %v1374_v0 = vld [vmem:[#allocation4 + $0x30] sm:$0xff] }
 0x330   : > { %v1470_v32 = vmul.f32 %v3253_v26, %v1374_v0 }
 0x332   : > { %v1334_v1 = vpop.xlane.xlu1 %1333  ;;  %v1751_v35 = vld [vmem:[#allocation3 + $0x48] sm:$0xff] (!%p2207_p3) }
 0x333   : > { %v1350_v49 = vadd.f32 %v1334_v1, %v1286_v60  ;;  %v1372_v60 = vld [vmem:[#allocation4 + $0x20] sm:$0xff]  ;;  %v1373_v1 = vld [vmem:[#allocation4 + $0x28] sm:$0xff] }
 0x334   : > { %v1468_v27 = vmul.f32 %v3257_v39, %v1372_v60  ;;  %v1469_v47 = vmul.f32 %v3251_v61, %v1373_v1  ;;  %v1383_v39 = vld [vmem:[#allocation4 + $0x78] sm:$0xff] }
 0x335   : > { %1367 = vst.msk [vmem:[#allocation3 + $0x78] sm:$0xff] %vm1351_vm4, %v1350_v49 }
 0x336   : > { %v1304_v24 = vpop.xlane.xlu1 %1303 }
 0x337   : > { %v1340_v30 = vadd.f32 %v1304_v24, %v1276_v44 }
 0x338   : > { %v1331_v45 = vpop.xlane.xlu0 %1330 }
 0x339   : > { %1357 = vst.msk [vmem:[#allocation3 + $0x28] sm:$0xff] %vm1351_vm4, %v1340_v30  ;;  %v1349_v31 = vadd.f32 %v1331_v45, %v1285_v21  ;;  %v1382_v45 = vld [vmem:[#allocation4 + $0x70] sm:$0xff] }
 0x33a   : > { %v1328_v54 = vpop.xlane.xlu1 %1327 }
 0x33b   : > { %1366 = vst.msk [vmem:[#allocation3 + $0x70] sm:$0xff] %vm1351_vm4, %v1349_v31  ;;  %v1348_v16 = vadd.f32 %v1328_v54, %v1284_v29  ;;  %v1380_v54 = vld [vmem:[#allocation4 + $0x60] sm:$0xff] }
 0x33c   : > { %v1301_v43 = vpop.xlane.xlu0 %1300  ;;  %v1476_v61 = vmul.f32 %v3262_v40, %v1380_v54  ;;  %v1752_v40 = vld [vmem:[#allocation3 + $0x50] sm:$0xff] (!%p2207_p3) }
 0x33d   : > { %1365 = vst.msk [vmem:[#allocation3 + $0x68] sm:$0xff] %vm1351_vm4, %v1348_v16  ;;  %v1339_v55 = vadd.f32 %v1301_v43, %v1275_v12  ;;  %v1768_v19 = vadd.f32 (!%p2207_p3), 1e-08, %v1752_v40 }
 0x33e   : > { %v1457_v51 = vpop.permute.xlu1 %1456 }
 0x33f   : > { %1356 = vst.msk [vmem:[#allocation3 + $0x20] sm:$0xff] %vm1351_vm4, %v1339_v55  ;;  %v1478_v12 = vmul.f32 %v1457_v51, %v1382_v45  ;;  %2527 = vrcp.f32 (!%p2207_p3), %v1768_v19 }
 0x340   : > { %v1325_v56 = vpop.xlane.xlu0 %1324  ;;  %v1747_v0 = vld [vmem:[#allocation3 + $0x28] sm:$0xff] (!%p2207_p3) }
 0x341   : > { %v1347_v22 = vadd.f32 %v1325_v56, %v1283_v23  ;;  %v1477_v56 = vmul.f32 %v3255_v38, %v1381_v52  ;;  %v2650_v38 = vmov (!%p2207_p3), 0   ;;  %v1763_v1 = vadd.f32 (!%p2207_p3), 1e-08, %v1747_v0 }
 0x342   : > { %2506 = vset.pattern.permute.xlu1 (!%p2207_p3), %v2650_v38  ;;  %2505 = vset.pattern.permute.xlu0 (!%p2207_p3), %v2650_v38 }
 0x343   : > { %1364 = vst.msk [vmem:[#allocation3 + $0x60] sm:$0xff] %vm1351_vm4, %v1347_v22 }
 0x346   : > { %v1746_v60 = vld [vmem:[#allocation3 + $0x20] sm:$0xff] (!%p2207_p3) }
 0x348   : > { %v1462_v16 = vpop.permute.xlu0 %1461 }
 0x349   : > { %v1479_v7 = vmul.f32 %v1462_v16, %v1383_v39 }
 0x34a   : > { %v1754_v62 = vld [vmem:[#allocation3 + $0x60] sm:$0xff] (!%p2207_p3) }
 0x36c   : > { %v2300_v2 = vpop.f32.mrb[8].mxu0 }
 0x36d   : > { %v1692_v41 = vadd.f32 %v2300_v2, %v1466_v58  ;;  %v1558_v10 = vpop.f32.mrb[9].mxu0  ;;  %v1766_v2 = vadd.f32 (!%p2207_p3), 1e-08, %v1750_v63 }
 0x36e   : > { %v1690_v33 = vadd.f32 %v1558_v10, %v1464_v59  ;;  %v2301_v25 = vpop.f32.mrb[10].mxu0  ;;  %v1753_v59 = vld [vmem:[#allocation3 + $0x58] sm:$0xff] (!%p2207_p3)  ;;  %v1767_v10 = vadd.f32 (!%p2207_p3), 1e-08, %v1751_v35 }
 0x36f   : > { %1708 = vst.msk [vmem:[#allocation4 + $0x10] sm:$0xff] %vm799_vm2, %v1692_v41  ;;  %v1693_v8 = vadd.f32 %v2301_v25, %v1467_v3  ;;  %v1561_v9 = vpop.f32.mrb[11].mxu0  ;;  %v1769_v3 = vadd.f32 (!%p2207_p3), 1e-08, %v1753_v59  ;;  %v1755_v41 = vld [vmem:[#allocation3 + $0x68] sm:$0xff] (!%p2207_p3)  ;;  %2529 = vrcp.f32 (!%p2207_p3), %v1766_v2  ;;  %v1757_v25 = vld [vmem:[#allocation3 + $0x78] sm:$0xff] (!%p2207_p3) }
 0x370   : > { %1706 = vst.msk [vmem:[#allocation4] sm:$0xff] %vm799_vm2, %v1690_v33  ;;  %v1691_v6 = vadd.f32 %v1561_v9, %v1465_v11  ;;  %v2316_v13 = vpop.f32.mrb[8].mxu1  ;;  %v1771_v11 = vadd.f32 (!%p2207_p3), 1e-08, %v1755_v41  ;;  %v1770_v33 = vadd.f32 (!%p2207_p3), 1e-08, %v1754_v62 }
 0x371   : > { %1709 = vst.msk [vmem:[#allocation4 + $0x18] sm:$0xff] %vm799_vm2, %v1693_v8  ;;  %v1700_v46 = vadd.f32 %v2316_v13, %v1474_v14  ;;  %v1659_v17 = vpop.f32.mrb[9].mxu1  ;;  %2531 = vrcp.f32 (!%p2207_p3), %v1769_v3  ;;  %v1756_v14 = vld [vmem:[#allocation3 + $0x70] sm:$0xff] (!%p2207_p3)  ;;  %v1773_v42 = vadd.f32 (!%p2207_p3), 1e-08, %v1757_v25  ;;  %v1743_v9 = vld [vmem:[#allocation3 + $0x8] sm:$0xff] (!%p2207_p3) }
 0x372   : > { %1707 = vst.msk [vmem:[#allocation4 + $0x8] sm:$0xff] %vm799_vm2, %v1691_v6  ;;  %v1698_v15 = vadd.f32 %v1659_v17, %v1472_v57  ;;  %v2317_v20 = vpop.f32.mrb[10].mxu1  ;;  %2533 = vrcp.f32 (!%p2207_p3), %v1767_v10  ;;  %v1772_v8 = vadd.f32 (!%p2207_p3), 1e-08, %v1756_v14  ;;  %v1742_v57 = vld [vmem:[#allocation3] sm:$0xff] (!%p2207_p3)  ;;  %v2528_v6 = vpop.eup (!%p2207_p3), %2527  ;;  %v1745_v17 = vld [vmem:[#allocation3 + $0x18] sm:$0xff] (!%p2207_p3) }
 0x373   : > { %1716 = vst.msk [vmem:[#allocation4 + $0x50] sm:$0xff] %vm799_vm2, %v1700_v46  ;;  %v1701_v5 = vadd.f32 %v2317_v20, %v1475_v50  ;;  %v1662_v48 = vpop.f32.mrb[11].mxu1  ;;  %2535 = vrcp.f32 (!%p2207_p3), %v1771_v11  ;;  %v1759_v13 = vadd.f32 (!%p2207_p3), 1e-08, %v1743_v9  ;;  %1858 = vperm.xlu1 (!%p2207_p3), %2506, %v2528_v6   ;;  %v1758_v46 = vadd.f32 (!%p2207_p3), 1e-08, %v1742_v57 }
 0x374   : > { %1714 = vst.msk [vmem:[#allocation4 + $0x40] sm:$0xff] %vm799_vm2, %v1698_v15  ;;  %v1699_v4 = vadd.f32 %v1662_v48, %v1473_v36  ;;  %2537 = vrcp.f32 (!%p2207_p3), %v1770_v33  ;;  %v1744_v15 = vld [vmem:[#allocation3 + $0x10] sm:$0xff] (!%p2207_p3) }
 0x375   : > { %1717 = vst.msk [vmem:[#allocation4 + $0x58] sm:$0xff] %vm799_vm2, %v1701_v5  ;;  %2539 = vrcp.f32 (!%p2207_p3), %v1773_v42  ;;  %v1761_v5 = vadd.f32 (!%p2207_p3), 1e-08, %v1745_v17  ;;  %v1760_v48 = vadd.f32 (!%p2207_p3), 1e-08, %v1744_v15 }
 0x376   : > { %1715 = vst.msk [vmem:[#allocation4 + $0x48] sm:$0xff] %vm799_vm2, %v1699_v4  ;;  %2541 = vrcp.f32 (!%p2207_p3), %v1772_v8 }
 0x377   : > { %2543 = vrcp.f32 (!%p2207_p3), %v1759_v13 }
 0x378   : > { %v2304_v49 = vpop.f32.mrb[12].mxu0  ;;  %2545 = vrcp.f32 (!%p2207_p3), %v1758_v46  ;;  %v1792_v46 = vld [vmem:[#allocation4 + $0x10] sm:$0xff] (!%p2207_p3) }
 0x379   : > { %v1696_v44 = vadd.f32 %v2304_v49, %v1470_v32  ;;  %v1574_v24 = vpop.f32.mrb[13].mxu0  ;;  %v2530_v50 = vpop.eup (!%p2207_p3), %2529  ;;  %2547 = vrcp.f32 (!%p2207_p3), %v1761_v5  ;;  %v1762_v32 = vadd.f32 (!%p2207_p3), 1e-08, %v1746_v60  ;;  %v1791_v17 = vld [vmem:[#allocation4 + $0x8] sm:$0xff] (!%p2207_p3) }
 0x37a   : > { %v1694_v30 = vadd.f32 %v1574_v24, %v1468_v27  ;;  %v2305_v21 = vpop.f32.mrb[14].mxu0  ;;  %1848 = vperm.xlu0 (!%p2207_p3), %2505, %v2530_v50   ;;  %2549 = vrcp.f32 (!%p2207_p3), %v1760_v48  ;;  %v1749_v27 = vld [vmem:[#allocation3 + $0x38] sm:$0xff] (!%p2207_p3)  ;;  %v1800_v52 = vld [vmem:[#allocation4 + $0x50] sm:$0xff] (!%p2207_p3) }
 0x37b   : > { %1712 = vst.msk [vmem:[#allocation4 + $0x30] sm:$0xff] %vm799_vm2, %v1696_v44  ;;  %v1697_v31 = vadd.f32 %v2305_v21, %v1471_v28  ;;  %v1577_v29 = vpop.f32.mrb[15].mxu0  ;;  %v2532_v36 = vpop.eup (!%p2207_p3), %2531  ;;  %v1748_v28 = vld [vmem:[#allocation3 + $0x30] sm:$0xff] (!%p2207_p3)  ;;  %2551 = vrcp.f32 (!%p2207_p3), %v1763_v1  ;;  %v1765_v24 = vadd.f32 (!%p2207_p3), 1e-08, %v1749_v27  ;;  %v1793_v50 = vld [vmem:[#allocation4 + $0x18] sm:$0xff] (!%p2207_p3) }
 0x37c   : > { %1710 = vst.msk [vmem:[#allocation4 + $0x20] sm:$0xff] %vm799_vm2, %v1694_v30  ;;  %v1695_v26 = vadd.f32 %v1577_v29, %v1469_v47  ;;  %v2534_v20 = vpop.eup (!%p2207_p3), %2533  ;;  %1863 = vperm.xlu1 (!%p2207_p3), %2506, %v2532_v36   ;;  %2553 = vrcp.f32 (!%p2207_p3), %v1762_v32  ;;  %v1764_v47 = vadd.f32 (!%p2207_p3), 1e-08, %v1748_v28  ;;  %v1790_v36 = vld [vmem:[#allocation4] sm:$0xff] (!%p2207_p3) }
 0x37d   : > { %1713 = vst.msk [vmem:[#allocation4 + $0x38] sm:$0xff] %vm799_vm2, %v1697_v31  ;;  %v2536_v4 = vpop.eup (!%p2207_p3), %2535  ;;  %2555 = vrcp.f32 (!%p2207_p3), %v1765_v24 }
 0x37e   : > { %1711 = vst.msk [vmem:[#allocation4 + $0x28] sm:$0xff] %vm799_vm2, %v1695_v26  ;;  %1853 = vperm.xlu0 (!%p2207_p3), %2505, %v2534_v20   ;;  %v2538_v37 = vpop.eup (!%p2207_p3), %2537  ;;  %2557 = vrcp.f32 (!%p2207_p3), %v1764_v47 }
 0x37f   : > { %v2320_v43 = vpop.f32.mrb[12].mxu1  ;;  %1741 = sbr.rel (%p2207_p3) target bundleno = 1155 (0x483), region = 163  ;;  %v2540_v49 = vpop.eup (!%p2207_p3), %2539 }
 0x380   : > { %v1704_v55 = vadd.f32 %v2320_v43, %v1478_v12  ;;  %v1675_v23 = vpop.f32.mrb[13].mxu1  ;;  %1873 = vperm.xlu1 (!%p2207_p3), %2506, %v2536_v4   ;;  %v2542_v44 = vpop.eup (!%p2207_p3), %2541  ;;  %v1801_v12 = vld [vmem:[#allocation4 + $0x58] sm:$0xff] (!%p2207_p3)  ;;  %v1799_v43 = vld [vmem:[#allocation4 + $0x48] sm:$0xff] (!%p2207_p3) }
 0x381   : > { %v1702_v22 = vadd.f32 %v1675_v23, %v1476_v61  ;;  %v2321_v53 = vpop.f32.mrb[14].mxu1  ;;  %v2544_v30 = vpop.eup (!%p2207_p3), %2543  ;;  %v1798_v61 = vld [vmem:[#allocation4 + $0x40] sm:$0xff] (!%p2207_p3) }
 0x382   : > { %1720 = vst.msk [vmem:[#allocation4 + $0x70] sm:$0xff] %vm799_vm2, %v1704_v55  ;;  %v1705_v18 = vadd.f32 %v2321_v53, %v1479_v7  ;;  %v1678_v34 = vpop.f32.mrb[15].mxu1  ;;  %1868 = vperm.xlu0 (!%p2207_p3), %2505, %v2538_v37   ;;  %v2546_v21 = vpop.eup (!%p2207_p3), %2545 }
 0x383   : > { %1718 = vst.msk [vmem:[#allocation4 + $0x60] sm:$0xff] %vm799_vm2, %v1702_v22  ;;  %v1703_v58 = vadd.f32 %v1678_v34, %v1477_v56  ;;  %v2548_v45 = vpop.eup (!%p2207_p3), %2547 }
 0x384   : > { %1721 = vst.msk [vmem:[#allocation4 + $0x78] sm:$0xff] %vm799_vm2, %v1705_v18  ;;  %1883 = vperm.xlu1 (!%p2207_p3), %2506, %v2540_v49   ;;  %v2550_v51 = vpop.eup (!%p2207_p3), %2549  ;;  %v1794_v49 = vld [vmem:[#allocation4 + $0x20] sm:$0xff] (!%p2207_p3) }
 0x385   : > { %1719 = vst.msk [vmem:[#allocation4 + $0x68] sm:$0xff] %vm799_vm2, %v1703_v58  ;;  %v2552_v31 = vpop.eup (!%p2207_p3), %2551  ;;  %v1795_v27 = vld [vmem:[#allocation4 + $0x28] sm:$0xff] (!%p2207_p3) }
 0x386   : > { %1878 = vperm.xlu0 %2505, %v2542_v44   ;;  %v2554_v29 = vpop.eup %2553 }
 0x387   : > { %v2556_v54 = vpop.eup %2555 }
 0x388   : > { %1813 = vperm.xlu1 %2506, %v2544_v30   ;;  %v2558_v26 = vpop.eup %2557 }
 0x389   : > { %v1804_v3 = vld [vmem:[#allocation4 + $0x70] sm:$0xff] }
 0x38a   : > { %1808 = vperm.xlu0 %2505, %v2546_v21   ;;  %v1802_v58 = vld [vmem:[#allocation4 + $0x60] sm:$0xff] }
 0x38b   : > { %v1805_v2 = vld [vmem:[#allocation4 + $0x78] sm:$0xff] }
 0x38c   : > { %1823 = vperm.xlu1 %2506, %v2548_v45   ;;  %v1803_v18 = vld [vmem:[#allocation4 + $0x68] sm:$0xff] }
 0x38e   : > { %1818 = vperm.xlu0 %2505, %v2550_v51  }
 0x390   : > { %1833 = vperm.xlu1 %2506, %v2552_v31  }
 0x392   : > { %1828 = vperm.xlu0 %2505, %v2554_v29  }
 0x394   : > { %1843 = vperm.xlu1 %2506, %v2556_v54  }
 0x396   : > { %1838 = vperm.xlu0 %2505, %v2558_v26  }
 0x3f2   : > { %v1859_v39 = vpop.permute.xlu1 %1858 }
 0x3f3   : > { %v1896_v55 = vmul.f32 %v1859_v39, %v1800_v52  ;;  %v1796_v52 = vld [vmem:[#allocation4 + $0x30] sm:$0xff] }
 0x3f9   : > { %v1849_v16 = vpop.permute.xlu0 %1848 }
 0x3fa   : > { %v1894_v22 = vmul.f32 %v1849_v16, %v1798_v61  ;;  %v1797_v16 = vld [vmem:[#allocation4 + $0x38] sm:$0xff] }
 0x3fb   : > { %v1864_v7 = vpop.permute.xlu1 %1863 }
 0x3fc   : > { %v1897_v23 = vmul.f32 %v1864_v7, %v1801_v12 }
 0x3fd   : > { %v1854_v56 = vpop.permute.xlu0 %1853 }
 0x3fe   : > { %v1895_v53 = vmul.f32 %v1854_v56, %v1799_v43  ;;  %v2512_v34 = vpack.i.bf16 %v1897_v23, %v1896_v55 }
 0x3ff   : > { %v1874_v63 = vpop.permute.xlu1 %1873 }
 0x400   : > { %v2507_v40 = vpack.i.bf16 %v1895_v53, %v1894_v22  ;;  %v1899_v59 = vmul.f32 %v1874_v63, %v1803_v18  ;;  %2513 = vrot.lane.b32.xlu1 %v2512_v34, %s2651_s0 }
 0x401   : > { %v1869_v38 = vpop.permute.xlu0 %1868 }
 0x402   : > { %v1898_v19 = vmul.f32 %v1869_v38, %v1802_v58  ;;  %2508 = vrot.lane.b32.xlu0 %v2507_v40, %s2651_s0 }
 0x403   : > { %v1884_v41 = vpop.permute.xlu1 %1883 }
 0x404   : > { %v2517_v35 = vpack.i.bf16 %v1899_v59, %v1898_v19  ;;  %v1901_v10 = vmul.f32 %v1884_v41, %v1805_v2 }
 0x405   : > { %v1879_v62 = vpop.permute.xlu0 %1878 }
 0x406   : > { %v1900_v11 = vmul.f32 %v1879_v62, %v1804_v3  ;;  %2518 = vrot.lane.b32.xlu0 %v2517_v35, %s2651_s0 }
 0x407   : > { %v1814_v25 = vpop.permute.xlu1 %1813 }
 0x408   : > { %v2522_v33 = vpack.i.bf16 %v1901_v10, %v1900_v11  ;;  %v1887_v60 = vmul.f32 %v1814_v25, %v1791_v17 }
 0x409   : > { %v1809_v14 = vpop.permute.xlu0 %1808 }
 0x40a   : > { %2523 = vrot.lane.b32.xlu1 %v2522_v33, %s2651_s0  ;;  %v1886_v37 = vmul.f32 %v1809_v14, %v1790_v36 }
 0x40b   : > { %v1824_v42 = vpop.permute.xlu1 %1823 }
 0x40c   : > { %v1889_v20 = vmul.f32 %v1824_v42, %v1793_v50 }
 0x40d   : > { %v1819_v8 = vpop.permute.xlu0 %1818 }
 0x40e   : > { %v1888_v5 = vmul.f32 %v1819_v8, %v1792_v46 }
 0x40f   : > { %v1834_v9 = vpop.permute.xlu1 %1833 }
 0x410   : > { %v1891_v29 = vmul.f32 %v1834_v9, %v1795_v27 }
 0x411   : > { %v1829_v57 = vpop.permute.xlu0 %1828 }
 0x412   : > { %v1890_v54 = vmul.f32 %v1829_v57, %v1794_v49 }
 0x413   : > { %v1844_v6 = vpop.permute.xlu1 %1843 }
 0x414   : > { %v1893_v23 = vmul.f32 %v1844_v6, %v1797_v16 }
 0x415   : > { %v1839_v13 = vpop.permute.xlu0 %1838 }
 0x416   : > { %v1892_v56 = vmul.f32 %v1839_v13, %v1796_v52 }
 0x472   : > { %v2514_v15 = vpop.permute.xlu1 %2513 }
 0x473   : > { %v2516_v48 = vunpack.i.h.bf16 %v2514_v15  ;;  %v2515_v0 = vunpack.i.l.bf16 %v2514_v15 }
 0x474   : > { %v2509_v4 = vpop.permute.xlu0 %2508 }
 0x475   : > { %v2511_v1 = vunpack.i.h.bf16 %v2509_v4  ;;  %v2510_v32 = vunpack.i.l.bf16 %v2509_v4  ;;  %v1937_v28 = vsel %vm799_vm2, %v1889_v20, %v2516_v48  ;;  %v1936_v44 = vsel %vm799_vm2, %v1888_v5, %v2515_v0 }
 0x476   : > { %v2221_v24 = vpack.c.bf16 %v1937_v28, %v1937_v28  ;;  %v2220_v47 = vpack.c.bf16 %v1936_v44, %v1936_v44 }
 0x477   : > { %v1935_v30 = vsel %vm799_vm2, %v1887_v60, %v2511_v1  ;;  %v1934_v21 = vsel %vm799_vm2, %v1886_v37, %v2510_v32 }
 0x478   : > { %v2219_v45 = vpack.c.bf16 %v1935_v30, %v1935_v30  ;;  %v2218_v51 = vpack.c.bf16 %v1934_v21, %v1934_v21  ;;  %v2519_v31 = vpop.permute.xlu0 %2518  ;;  %1978 = vst.msk [vmem:[%s2800_s6 + $0xc] sm:$0xf] %vm1974_vm5, %v2221_v24  ;;  %1977 = vst.msk [vmem:[%s2800_s6 + $0x8] sm:$0xf] %vm1974_vm5, %v2220_v47 }
 0x479   : > { %v2521_v26 = vunpack.i.h.bf16 %v2519_v31  ;;  %v2520_v39 = vunpack.i.l.bf16 %v2519_v31 }
 0x47a   : > { %1976 = vst.msk [vmem:[%s2800_s6 + $0x4] sm:$0xf] %vm1974_vm5, %v2219_v45  ;;  %1975 = vst.msk [vmem:[%s2800_s6] sm:$0xf] %vm1974_vm5, %v2218_v51 }
 0x47b   : > { %v1939_v12 = vsel %vm799_vm2, %v1891_v29, %v2521_v26  ;;  %v1938_v61 = vsel %vm799_vm2, %v1890_v54, %v2520_v39 }
 0x47c   : > { %v2223_v43 = vpack.c.bf16 %v1939_v12, %v1939_v12  ;;  %v2222_v7 = vpack.c.bf16 %v1938_v61, %v1938_v61  ;;  %v2524_v55 = vpop.permute.xlu1 %2523 }
 0x47d   : > { %v2526_v22 = vunpack.i.h.bf16 %v2524_v55  ;;  %v2525_v53 = vunpack.i.l.bf16 %v2524_v55 }
 0x47e   : > { %1980 = vst.msk [vmem:[%s2800_s6 + $0x14] sm:$0xf] %vm1974_vm5, %v2223_v43  ;;  %1979 = vst.msk [vmem:[%s2800_s6 + $0x10] sm:$0xf] %vm1974_vm5, %v2222_v7 }
 0x47f   : > { %v1941_v18 = vsel %vm799_vm2, %v1893_v23, %v2526_v22  ;;  %v1940_v34 = vsel %vm799_vm2, %v1892_v56, %v2525_v53 }
 0x480   : > { %v2225_v58 = vpack.c.bf16 %v1941_v18, %v1941_v18  ;;  %v2224_v40 = vpack.c.bf16 %v1940_v34, %v1940_v34 }
 0x482   : > { %1982 = vst.msk [vmem:[%s2800_s6 + $0x1c] sm:$0xf] %vm1974_vm5, %v2225_v58  ;;  %1981 = vst.msk [vmem:[%s2800_s6 + $0x18] sm:$0xf] %vm1974_vm5, %v2224_v40 }
 0x483 PF: > { %s13_s22 = sadd.s32 1, %s2645_s22   ;;  %s3391_s27 = sld [smem:[#allocation9_spill]] }
 0x484   : > { %p10_p4 = scmp.ge.s32.totalorder %s13_s22, 10   ;;  %s3392_s12 = smov %s2609_s13 }
 0x485   : > { %s3393_s13 = smov %s2763_s9  ;;  %s3394_s14 = smov %s2617_s15 }
 0x486   : > { %s3395_s15 = smov %s2760_s8  ;;  %s3396_s16 = smov %s2633_s19 }
 0x487   : > { %s3397_s17 = smov %s2637_s20  ;;  %s3398_s18 = smov %s2641_s21 }
 0x488   : > { %s3399_s19 = smov %s3403_s23  ;;  %s3400_s20 = smov %s3407_s24 }
 0x489   : > { %s3401_s21 = smov %s3391_s27  ;;  %12 = sbr.rel (!%p10_p4) target bundleno = 8 (0x8), region = 214 }

</bundles_post_ra>
